<compile_context>
chip_gen: v5e
topology: v5e:2x2
jax: 0.10.0
libtpu: 0.0.40
codegen_flags: <defaults>
</compile_context>

<pallas_src>
import functools
import math

import jax
import jax.numpy as jnp
from jax.experimental import pallas as pl
from jax.experimental.pallas import tpu as pltpu

LN_EPS = 1e-5        # nn.LayerNorm default eps
NEG_INF = -1e9       # additive mask bias (f32 scores)
VMEM_LIMIT = 48 * 1024 * 1024   # safe on v5e/v6e (128 MiB) and v7x (64 MiB)


# ----------------------------- in-kernel helpers -----------------------------

def _layernorm_f32(x, g, b):
    mu = jnp.mean(x, axis=-1, keepdims=True)
    var = jnp.mean((x - mu) ** 2, axis=-1, keepdims=True)
    return (x - mu) * jax.lax.rsqrt(var + LN_EPS) * g + b


def _softmax_rows(s):
    # s: (rows, cols) f32 scores (mask already applied additively)
    s = s - jnp.max(s, axis=-1, keepdims=True)
    p = jnp.exp(s)
    return p * pl.reciprocal(jnp.sum(p, axis=-1, keepdims=True), approx=True)


# ------------------------------ Pallas kernels -------------------------------

def _self_attn_sublayer_kernel(x_ref, bias_ref, g_ref, b_ref, wqkv_ref,
                               bqkv_ref, wo_ref, bo_ref, o_ref,
                               *, num_heads, scale):
    """x + Wo(MHA(LN(x), LN(x), LN(x), tgt_mask)) for one batch element."""
    x = x_ref[0]                                   # (T, D) f32 residual stream
    T, D = x.shape
    dh = D // num_heads
    nx = _layernorm_f32(x, g_ref[...], b_ref[...]).astype(jnp.bfloat16)
    qkv = jnp.dot(nx, wqkv_ref[...],
                  preferred_element_type=jnp.float32) + bqkv_ref[...]   # (T, 3D)
    bias = bias_ref[0]                             # (T, T) additive mask bias
    heads = []
    for h in range(num_heads):
        q = qkv[:, h * dh:(h + 1) * dh].astype(jnp.bfloat16)
        k = qkv[:, D + h * dh:D + (h + 1) * dh].astype(jnp.bfloat16)
        v = qkv[:, 2 * D + h * dh:2 * D + (h + 1) * dh].astype(jnp.bfloat16)
        s = jax.lax.dot_general(q, k, (((1,), (1,)), ((), ())),
                                preferred_element_type=jnp.float32)
        p = _softmax_rows(s * scale + bias)
        heads.append(jnp.dot(p.astype(jnp.bfloat16), v,
                             preferred_element_type=jnp.float32))
    o = jnp.concatenate(heads, axis=-1).astype(jnp.bfloat16)            # (T, D)
    out = jnp.dot(o, wo_ref[...], preferred_element_type=jnp.float32) + bo_ref[...]
    o_ref[0] = x + out


def _src_attn_sublayer_kernel(x_ref, mem_ref, g_ref, b_ref, wq_ref, bq_ref,
                              wkv_ref, bkv_ref, wo_ref, bo_ref, o_ref,
                              *, num_heads, scale):
    """x + Wo(MHA(LN(x), memory, memory, src_mask=None)) for one batch element."""
    x = x_ref[0]                                   # (T, D) f32
    mem = mem_ref[0]                               # (S, D) f32
    T, D = x.shape
    dh = D // num_heads
    nx = _layernorm_f32(x, g_ref[...], b_ref[...]).astype(jnp.bfloat16)
    qa = jnp.dot(nx, wq_ref[...],
                 preferred_element_type=jnp.float32) + bq_ref[...]      # (T, D)
    kv = jnp.dot(mem.astype(jnp.bfloat16), wkv_ref[...],
                 preferred_element_type=jnp.float32) + bkv_ref[...]     # (S, 2D)
    heads = []
    for h in range(num_heads):
        q = qa[:, h * dh:(h + 1) * dh].astype(jnp.bfloat16)
        k = kv[:, h * dh:(h + 1) * dh].astype(jnp.bfloat16)
        v = kv[:, D + h * dh:D + (h + 1) * dh].astype(jnp.bfloat16)
        s = jax.lax.dot_general(q, k, (((1,), (1,)), ((), ())),
                                preferred_element_type=jnp.float32) * scale
        p = _softmax_rows(s)
        heads.append(jnp.dot(p.astype(jnp.bfloat16), v,
                             preferred_element_type=jnp.float32))
    o = jnp.concatenate(heads, axis=-1).astype(jnp.bfloat16)            # (T, D)
    out = jnp.dot(o, wo_ref[...], preferred_element_type=jnp.float32) + bo_ref[...]
    o_ref[0] = x + out


def _ffn_sublayer_kernel(x_ref, g_ref, b_ref, w1_ref, b1_ref, w2_ref, b2_ref,
                         o_ref):
    """x + W2(relu(W1(LN(x)))) on an M-tile of rows."""
    x = x_ref[...]                                 # (TM, D) f32
    nx = _layernorm_f32(x, g_ref[...], b_ref[...]).astype(jnp.bfloat16)
    h = jnp.dot(nx, w1_ref[...], preferred_element_type=jnp.float32) + b1_ref[...]
    h = jnp.maximum(h, 0.0).astype(jnp.bfloat16)
    y = jnp.dot(h, w2_ref[...], preferred_element_type=jnp.float32) + b2_ref[...]
    o_ref[...] = x + y


def _head_kernel(x_ref, g_ref, b_ref, w_ref, bias_ref, o_ref, *, act):
    """Final LayerNorm fused with the output head; lane-padded (128-wide) output."""
    x = x_ref[...]                                 # (TM, D) f32
    nx = _layernorm_f32(x, g_ref[...], b_ref[...]).astype(jnp.bfloat16)
    y = jnp.dot(nx, w_ref[...], preferred_element_type=jnp.float32) + bias_ref[...]
    if act == "sigmoid":
        y = jax.nn.sigmoid(y)
    o_ref[...] = y


# --------------------------- cached pallas_call builders ---------------------

def _row_tile(m, cap=256):
    if m <= cap:
        return m
    for tm in (cap, 128, 64, 32, 16, 8):
        if m % tm == 0:
            return tm
    return m


def _bcast2d_spec(shape):
    return pl.BlockSpec(shape, lambda i: (0, 0))


@functools.lru_cache(maxsize=None)
def _build_self_attn(B, T, D, num_heads):
    scale = 1.0 / math.sqrt(D // num_heads)
    kernel = functools.partial(_self_attn_sublayer_kernel,
                               num_heads=num_heads, scale=scale)
    flops = 8 * B * T * D * D + 4 * B * T * T * D
    byts = 8 * B * T * D + 4 * B * T * T + 2 * B * (4 * D * D)
    return pl.pallas_call(
        kernel,
        out_shape=jax.ShapeDtypeStruct((B, T, D), jnp.float32),
        grid=(B,),
        in_specs=[
            pl.BlockSpec((1, T, D), lambda b: (b, 0, 0)),   # x
            pl.BlockSpec((1, T, T), lambda b: (b, 0, 0)),   # additive mask bias
            _bcast2d_spec((1, D)),                          # ln gamma
            _bcast2d_spec((1, D)),                          # ln beta
            _bcast2d_spec((D, 3 * D)),                      # Wqkv (bf16)
            _bcast2d_spec((1, 3 * D)),                      # bqkv
            _bcast2d_spec((D, D)),                          # Wo (bf16)
            _bcast2d_spec((1, D)),                          # bo
        ],
        out_specs=pl.BlockSpec((1, T, D), lambda b: (b, 0, 0)),
        compiler_params=pltpu.CompilerParams(
            dimension_semantics=("parallel",), vmem_limit_bytes=VMEM_LIMIT),
        cost_estimate=pl.CostEstimate(flops=flops,
                                      transcendentals=B * num_heads * T * T,
                                      bytes_accessed=byts),
    )


@functools.lru_cache(maxsize=None)
def _build_src_attn(B, T, S, D, num_heads):
    scale = 1.0 / math.sqrt(D // num_heads)
    kernel = functools.partial(_src_attn_sublayer_kernel,
                               num_heads=num_heads, scale=scale)
    flops = 4 * B * T * D * D + 4 * B * S * D * D + 4 * B * T * S * D
    byts = 8 * B * T * D + 4 * B * S * D + 2 * B * (4 * D * D)
    return pl.pallas_call(
        kernel,
        out_shape=jax.ShapeDtypeStruct((B, T, D), jnp.float32),
        grid=(B,),
        in_specs=[
            pl.BlockSpec((1, T, D), lambda b: (b, 0, 0)),   # x
            pl.BlockSpec((1, S, D), lambda b: (b, 0, 0)),   # encoder memory
            _bcast2d_spec((1, D)),                          # ln gamma
            _bcast2d_spec((1, D)),                          # ln beta
            _bcast2d_spec((D, D)),                          # Wq
            _bcast2d_spec((1, D)),                          # bq
            _bcast2d_spec((D, 2 * D)),                      # Wkv
            _bcast2d_spec((1, 2 * D)),                      # bkv
            _bcast2d_spec((D, D)),                          # Wo
            _bcast2d_spec((1, D)),                          # bo
        ],
        out_specs=pl.BlockSpec((1, T, D), lambda b: (b, 0, 0)),
        compiler_params=pltpu.CompilerParams(
            dimension_semantics=("parallel",), vmem_limit_bytes=VMEM_LIMIT),
        cost_estimate=pl.CostEstimate(flops=flops,
                                      transcendentals=B * num_heads * T * S,
                                      bytes_accessed=byts),
    )


@functools.lru_cache(maxsize=None)
def _build_ffn(M, TM, D, F):
    flops = 4 * M * D * F
    byts = 8 * M * D + 2 * (2 * D * F)
    return pl.pallas_call(
        _ffn_sublayer_kernel,
        out_shape=jax.ShapeDtypeStruct((M, D), jnp.float32),
        grid=(M // TM,),
        in_specs=[
            pl.BlockSpec((TM, D), lambda i: (i, 0)),        # x tile
            _bcast2d_spec((1, D)),                          # ln gamma
            _bcast2d_spec((1, D)),                          # ln beta
            _bcast2d_spec((D, F)),                          # W1 (bf16)
            _bcast2d_spec((1, F)),                          # b1
            _bcast2d_spec((F, D)),                          # W2 (bf16)
            _bcast2d_spec((1, D)),                          # b2
        ],
        out_specs=pl.BlockSpec((TM, D), lambda i: (i, 0)),
        compiler_params=pltpu.CompilerParams(
            dimension_semantics=("parallel",), vmem_limit_bytes=VMEM_LIMIT),
        cost_estimate=pl.CostEstimate(flops=flops, transcendentals=0,
                                      bytes_accessed=byts),
    )


@functools.lru_cache(maxsize=None)
def _build_head(M, TM, D, NPAD, act):
    kernel = functools.partial(_head_kernel, act=act)
    flops = 2 * M * D * NPAD
    byts = 4 * M * (D + NPAD) + 2 * D * NPAD
    return pl.pallas_call(
        kernel,
        out_shape=jax.ShapeDtypeStruct((M, NPAD), jnp.float32),
        grid=(M // TM,),
        in_specs=[
            pl.BlockSpec((TM, D), lambda i: (i, 0)),        # x tile
            _bcast2d_spec((1, D)),                          # norm gamma
            _bcast2d_spec((1, D)),                          # norm beta
            _bcast2d_spec((D, NPAD)),                       # padded head weight
            _bcast2d_spec((1, NPAD)),                       # padded head bias
        ],
        out_specs=pl.BlockSpec((TM, NPAD), lambda i: (i, 0)),
        compiler_params=pltpu.CompilerParams(
            dimension_semantics=("parallel",), vmem_limit_bytes=VMEM_LIMIT),
        cost_estimate=pl.CostEstimate(flops=flops,
                                      transcendentals=M * NPAD if act == "sigmoid" else 0,
                                      bytes_accessed=byts),
    )


# ------------------------------- model glue ----------------------------------

def decoder_layer(x, feature, tgt_bias, p, num_heads):
    B, T, D = x.shape
    S = feature.shape[1]
    x = _build_self_attn(B, T, D, num_heads)(
        x, tgt_bias, p["ln1_g"], p["ln1_b"],
        p["wqkv"], p["bqkv"], p["wo_self"], p["bo_self"])
    x = _build_src_attn(B, T, S, D, num_heads)(
        x, feature, p["ln2_g"], p["ln2_b"],
        p["wq_src"], p["bq_src"], p["wkv_src"], p["bkv_src"],
        p["wo_src"], p["bo_src"])
    M = B * T
    tm = _row_tile(M)
    x2 = _build_ffn(M, tm, D, p["ffn_w1"].shape[1])(
        x.reshape(M, D), p["ln3_g"], p["ln3_b"],
        p["ffn_w1"], p["ffn_b1"], p["ffn_w2"], p["ffn_b2"])
    return x2.reshape(B, T, D)


def head_forward(x2d, norm_g, norm_b, w, b, act):
    M, D = x2d.shape
    N = w.shape[1]
    npad = max(128, ((N + 127) // 128) * 128)           # lane-dense output block
    w_p = jnp.pad(w, ((0, 0), (0, npad - N)))
    b_p = jnp.pad(b, ((0, 0), (0, npad - N)))
    tm = _row_tile(M)
    out = _build_head(M, tm, D, npad, act)(x2d, norm_g, norm_b, w_p, b_p)
    return out[:, :N]


def make_tgt_bias(tgt, pad_idx):
    """(B, T, T) additive f32 bias: 0 where kept, -1e9 where masked.

    Matches the reference mask: (tgt != PAD)[:,None,:,None] & tril(T,T),
    shared across heads (applied inside the attention kernel once per batch).
    """
    B, T = tgt.shape
    keep_q = (tgt != pad_idx)[:, :, None]                   # (B, T, 1) query pad
    causal = jnp.tril(jnp.ones((T, T), dtype=bool))[None]   # (1, T, T)
    keep = jnp.logical_and(keep_q, causal)
    return jnp.where(keep, 0.0, NEG_INF).astype(jnp.float32)


def sinusoidal_pe(max_len, d_model):
    pos = jnp.arange(max_len, dtype=jnp.float32)[:, None]
    div = jnp.exp(jnp.arange(0, d_model, 2, dtype=jnp.float32)
                  * (-math.log(10000.0) / d_model))
    pe = jnp.zeros((max_len, d_model), jnp.float32)
    pe = pe.at[:, 0::2].set(jnp.sin(pos * div))
    pe = pe.at[:, 1::2].set(jnp.cos(pos * div))
    return pe


def decode(tgt, feature, tgt_bias, params, num_heads):
    B, T = tgt.shape
    D = params["embedding"].shape[1]
    x = params["embedding"][tgt] * math.sqrt(D)        # Embeddings (gather, f32)
    x = x + params["pe"][:T][None]                     # PositionalEncoding
    for lp in params["layers"]:                        # shared layers (num_layer-1)
        x = decoder_layer(x, feature, tgt_bias, lp, num_heads)
    cls_x = decoder_layer(x, feature, tgt_bias, params["cls_layer"], num_heads)
    bbox_x = decoder_layer(x, feature, tgt_bias, params["bbox_layer"], num_heads)
    M = B * T
    cls_out = head_forward(cls_x.reshape(M, D), params["norm_g"], params["norm_b"],
                           params["cls_w"], params["cls_b"], act="none")
    bbox_out = head_forward(bbox_x.reshape(M, D), params["norm_g"], params["norm_b"],
                            params["bbox_w"], params["bbox_b"], act="sigmoid")
    NC = params["cls_w"].shape[1]
    return cls_out.reshape(B, T, NC), bbox_out.reshape(B, T, 4)


def table_master_concat_forward(feat, out_enc, tgt_dict, params, *, num_heads,
                                pad_idx=0, train_mode=True):
    # `feat` is only used for `.device` in the PyTorch reference.
    del feat
    assert train_mode  # TODO(synk): greedy_forward (autoregressive test path) not implemented
    tgt = tgt_dict[:, :-1]
    tgt_bias = make_tgt_bias(tgt, pad_idx)
    return decode(tgt, out_enc, tgt_bias, params, num_heads)


# ------------------------------ parameter init --------------------------------

def _init_linear(key, fan_in, fan_out, scale=0.02):
    # Weights stored bf16 (MXU-native); biases f32 (added after f32 accumulation).
    w = (jax.random.normal(key, (fan_in, fan_out), jnp.float32) * scale
         ).astype(jnp.bfloat16)
    b = jnp.zeros((1, fan_out), jnp.float32)
    return w, b


def _init_decoder_layer(key, d_model, d_ff):
    ks = jax.random.split(key, 7)
    wqkv, bqkv = _init_linear(ks[0], d_model, 3 * d_model)      # fused self-attn QKV
    wo_self, bo_self = _init_linear(ks[1], d_model, d_model)
    wq_src, bq_src = _init_linear(ks[2], d_model, d_model)
    wkv_src, bkv_src = _init_linear(ks[3], d_model, 2 * d_model)  # fused src-attn KV
    wo_src, bo_src = _init_linear(ks[4], d_model, d_model)
    ffn_w1, ffn_b1 = _init_linear(ks[5], d_model, d_ff)
    ffn_w2, ffn_b2 = _init_linear(ks[6], d_ff, d_model)
    ones = jnp.ones((1, d_model), jnp.float32)
    zeros = jnp.zeros((1, d_model), jnp.float32)
    return {
        "wqkv": wqkv, "bqkv": bqkv, "wo_self": wo_self, "bo_self": bo_self,
        "wq_src": wq_src, "bq_src": bq_src, "wkv_src": wkv_src, "bkv_src": bkv_src,
        "wo_src": wo_src, "bo_src": bo_src,
        "ffn_w1": ffn_w1, "ffn_b1": ffn_b1, "ffn_w2": ffn_w2, "ffn_b2": ffn_b2,
        "ln1_g": ones, "ln1_b": zeros,
        "ln2_g": ones, "ln2_b": zeros,
        "ln3_g": ones, "ln3_b": zeros,
    }


def init_params(key, num_layer, d_model, d_ff, num_classes, max_seq_len):
    ks = jax.random.split(key, num_layer + 4)
    layers = [_init_decoder_layer(ks[i], d_model, d_ff) for i in range(num_layer - 1)]
    cls_layer = _init_decoder_layer(ks[num_layer - 1], d_model, d_ff)
    bbox_layer = _init_decoder_layer(ks[num_layer], d_model, d_ff)
    cls_w, cls_b = _init_linear(ks[num_layer + 1], d_model, num_classes)
    bbox_w, bbox_b = _init_linear(ks[num_layer + 2], d_model, 4)
    emb = jax.random.normal(ks[num_layer + 3], (num_classes, d_model), jnp.float32) * 0.02
    return {
        "layers": layers, "cls_layer": cls_layer, "bbox_layer": bbox_layer,
        "cls_w": cls_w, "cls_b": cls_b, "bbox_w": bbox_w, "bbox_b": bbox_b,
        "norm_g": jnp.ones((1, d_model), jnp.float32),
        "norm_b": jnp.zeros((1, d_model), jnp.float32),
        "embedding": emb,
        "pe": sinusoidal_pe(max_seq_len + 1, d_model),
    }


# ----------------------------------- main --------------------------------------

if __name__ == "__main__":
    B, S, D, H, NC, DFF, NL = 2, 16, 32, 4, 10, 64, 3
    T_PLUS_1 = 9  # tgt_dict length; decoder sees T = 8 tokens

    key = jax.random.PRNGKey(0)
    k_feat, k_enc, k_tgt, k_param = jax.random.split(key, 4)

    feat = jax.random.normal(k_feat, (B, D, 8, 8), jnp.float32)   # NCHW feature (unused)
    out_enc = jax.random.normal(k_enc, (B, S, D), jnp.float32)    # encoder memory [B, S, D]
    tgt_dict = jax.random.randint(k_tgt, (B, T_PLUS_1), 0, NC)    # token ids

    params = init_params(k_param, NL, D, DFF, NC, max_seq_len=64)

    fwd = jax.jit(lambda f, e, t, p: table_master_concat_forward(f, e, t, p, num_heads=H))
    cls_out, bbox_out = fwd(feat, out_enc, tgt_dict, params)
    jax.block_until_ready((cls_out, bbox_out))

    assert cls_out.shape == (B, T_PLUS_1 - 1, NC)
    assert bbox_out.shape == (B, T_PLUS_1 - 1, 4)
    assert bool(jnp.all(jnp.isfinite(cls_out))) and bool(jnp.all(jnp.isfinite(bbox_out)))
    print("KERNEL_OK")
</pallas_src>

<mosaic_0001>
module attributes {stable_mosaic.version = 11 : i64} {
  func.func @_ffn_sublayer_kernel(%arg0: i32, %arg1: memref<16x32xf32, #tpu.memory_space<vmem>>, %arg2: memref<1x32xf32, #tpu.memory_space<vmem>>, %arg3: memref<1x32xf32, #tpu.memory_space<vmem>>, %arg4: memref<32x64xbf16, #tpu.memory_space<vmem>>, %arg5: memref<1x64xf32, #tpu.memory_space<vmem>>, %arg6: memref<64x32xbf16, #tpu.memory_space<vmem>>, %arg7: memref<1x32xf32, #tpu.memory_space<vmem>>, %arg8: memref<16x32xf32, #tpu.memory_space<vmem>>) attributes {dimension_semantics = [#tpu.dimension_semantics<parallel>], iteration_bounds = array<i64: 1>, scalar_prefetch = 0 : i64, scratch_operands = 0 : i64, tpu.core_type = #tpu.core_type<tc>, window_params = [{transform_indices = @transform_0, window_bounds = array<i64: 16, 32>}, {pipeline_mode = #tpu.pipeline_mode<synchronous>, transform_indices = @transform_1, window_bounds = array<i64: 1, 32>}, {pipeline_mode = #tpu.pipeline_mode<synchronous>, transform_indices = @transform_2, window_bounds = array<i64: 1, 32>}, {pipeline_mode = #tpu.pipeline_mode<synchronous>, transform_indices = @transform_3, window_bounds = array<i64: 32, 64>}, {pipeline_mode = #tpu.pipeline_mode<synchronous>, transform_indices = @transform_4, window_bounds = array<i64: 1, 64>}, {pipeline_mode = #tpu.pipeline_mode<synchronous>, transform_indices = @transform_5, window_bounds = array<i64: 64, 32>}, {pipeline_mode = #tpu.pipeline_mode<synchronous>, transform_indices = @transform_6, window_bounds = array<i64: 1, 32>}, {transform_indices = @transform_7, window_bounds = array<i64: 16, 32>}]} {
    %c0 = arith.constant 0 : index
    %c0_0 = arith.constant 0 : index
    %0 = vector.load %arg1[%c0, %c0_0] : memref<16x32xf32, #tpu.memory_space<vmem>>, vector<16x32xf32>
    %c0_1 = arith.constant 0 : index
    %c0_2 = arith.constant 0 : index
    %1 = vector.load %arg2[%c0_1, %c0_2] : memref<1x32xf32, #tpu.memory_space<vmem>>, vector<1x32xf32>
    %c0_3 = arith.constant 0 : index
    %c0_4 = arith.constant 0 : index
    %2 = vector.load %arg3[%c0_3, %c0_4] : memref<1x32xf32, #tpu.memory_space<vmem>>, vector<1x32xf32>
    %cst = arith.constant dense<0.000000e+00> : vector<16xf32>
    %3 = vector.multi_reduction <add>, %0, %cst [1] : vector<16x32xf32> to vector<16xf32>
    %4 = vector.shape_cast %3 : vector<16xf32> to vector<16x1xf32>
    %cst_5 = arith.constant 3.200000e+01 : f32
    %5 = vector.broadcast %cst_5 : f32 to vector<16x1xf32>
    %6 = arith.divf %4, %5 : vector<16x1xf32>
    %7 = vector.broadcast %6 : vector<16x1xf32> to vector<16x32xf32>
    %8 = arith.subf %0, %7 : vector<16x32xf32>
    %9 = arith.mulf %8, %8 : vector<16x32xf32>
    %cst_6 = arith.constant dense<0.000000e+00> : vector<16xf32>
    %10 = vector.multi_reduction <add>, %9, %cst_6 [1] : vector<16x32xf32> to vector<16xf32>
    %11 = vector.shape_cast %10 : vector<16xf32> to vector<16x1xf32>
    %cst_7 = arith.constant 3.200000e+01 : f32
    %12 = vector.broadcast %cst_7 : f32 to vector<16x1xf32>
    %13 = arith.divf %11, %12 : vector<16x1xf32>
    %14 = vector.broadcast %6 : vector<16x1xf32> to vector<16x32xf32>
    %15 = arith.subf %0, %14 : vector<16x32xf32>
    %cst_8 = arith.constant 9.99999974E-6 : f32
    %16 = vector.broadcast %cst_8 : f32 to vector<16x1xf32>
    %17 = arith.addf %13, %16 : vector<16x1xf32>
    %18 = math.rsqrt %17 : vector<16x1xf32>
    %19 = vector.broadcast %18 : vector<16x1xf32> to vector<16x32xf32>
    %20 = arith.mulf %15, %19 : vector<16x32xf32>
    %21 = vector.broadcast %1 : vector<1x32xf32> to vector<16x32xf32>
    %22 = arith.mulf %20, %21 : vector<16x32xf32>
    %23 = vector.broadcast %2 : vector<1x32xf32> to vector<16x32xf32>
    %24 = arith.addf %22, %23 : vector<16x32xf32>
    %25 = arith.truncf %24 : vector<16x32xf32> to vector<16x32xbf16>
    %c0_9 = arith.constant 0 : index
    %c0_10 = arith.constant 0 : index
    %26 = vector.load %arg4[%c0_9, %c0_10] : memref<32x64xbf16, #tpu.memory_space<vmem>>, vector<32x64xbf16>
    %cst_11 = arith.constant dense<0.000000e+00> : vector<16x64xf32>
    %27 = tpu.matmul %25, %26, %cst_11 {dimension_numbers = #tpu.dot_dimension_numbers<[1], [0], [0], [1], [0, 0, 1, 1], [], []>} : vector<16x32xbf16>, vector<32x64xbf16>, vector<16x64xf32> -> vector<16x64xf32>
    %c0_12 = arith.constant 0 : index
    %c0_13 = arith.constant 0 : index
    %28 = vector.load %arg5[%c0_12, %c0_13] : memref<1x64xf32, #tpu.memory_space<vmem>>, vector<1x64xf32>
    %29 = vector.broadcast %28 : vector<1x64xf32> to vector<16x64xf32>
    %30 = arith.addf %27, %29 : vector<16x64xf32>
    %cst_14 = arith.constant 0.000000e+00 : f32
    %31 = vector.broadcast %cst_14 : f32 to vector<16x64xf32>
    %32 = arith.maximumf %30, %31 : vector<16x64xf32>
    %33 = arith.truncf %32 : vector<16x64xf32> to vector<16x64xbf16>
    %c0_15 = arith.constant 0 : index
    %c0_16 = arith.constant 0 : index
    %34 = vector.load %arg6[%c0_15, %c0_16] : memref<64x32xbf16, #tpu.memory_space<vmem>>, vector<64x32xbf16>
    %cst_17 = arith.constant dense<0.000000e+00> : vector<16x32xf32>
    %35 = tpu.matmul %33, %34, %cst_17 {dimension_numbers = #tpu.dot_dimension_numbers<[1], [0], [0], [1], [0, 0, 1, 1], [], []>} : vector<16x64xbf16>, vector<64x32xbf16>, vector<16x32xf32> -> vector<16x32xf32>
    %c0_18 = arith.constant 0 : index
    %c0_19 = arith.constant 0 : index
    %36 = vector.load %arg7[%c0_18, %c0_19] : memref<1x32xf32, #tpu.memory_space<vmem>>, vector<1x32xf32>
    %37 = vector.broadcast %36 : vector<1x32xf32> to vector<16x32xf32>
    %38 = arith.addf %35, %37 : vector<16x32xf32>
    %39 = arith.addf %0, %38 : vector<16x32xf32>
    %c0_20 = arith.constant 0 : index
    %c0_21 = arith.constant 0 : index
    %40 = vector.load %arg8[%c0_20, %c0_21] : memref<16x32xf32, #tpu.memory_space<vmem>>, vector<16x32xf32>
    tpu.vector_store %arg8[%c0_20, %c0_21], %39 {strides = array<i32>} : memref<16x32xf32, #tpu.memory_space<vmem>>, vector<16x32xf32>,
    return
  }
  func.func @transform_0(%arg0: i32) -> (i32, i32) {
    %c0_i32 = arith.constant 0 : i32
    %c0_i32_0 = arith.constant 0 : i32
    return %arg0, %c0_i32 : i32, i32
  }
  func.func @transform_1(%arg0: i32) -> (i32, i32) {
    %c0_i32 = arith.constant 0 : i32
    %c0_i32_0 = arith.constant 0 : i32
    %c0_i32_1 = arith.constant 0 : i32
    return %c0_i32, %c0_i32_0 : i32, i32
  }
  func.func @transform_2(%arg0: i32) -> (i32, i32) {
    %c0_i32 = arith.constant 0 : i32
    %c0_i32_0 = arith.constant 0 : i32
    %c0_i32_1 = arith.constant 0 : i32
    return %c0_i32, %c0_i32_0 : i32, i32
  }
  func.func @transform_3(%arg0: i32) -> (i32, i32) {
    %c0_i32 = arith.constant 0 : i32
    %c0_i32_0 = arith.constant 0 : i32
    %c0_i32_1 = arith.constant 0 : i32
    return %c0_i32, %c0_i32_0 : i32, i32
  }
  func.func @transform_4(%arg0: i32) -> (i32, i32) {
    %c0_i32 = arith.constant 0 : i32
    %c0_i32_0 = arith.constant 0 : i32
    %c0_i32_1 = arith.constant 0 : i32
    return %c0_i32, %c0_i32_0 : i32, i32
  }
  func.func @transform_5(%arg0: i32) -> (i32, i32) {
    %c0_i32 = arith.constant 0 : i32
    %c0_i32_0 = arith.constant 0 : i32
    %c0_i32_1 = arith.constant 0 : i32
    return %c0_i32, %c0_i32_0 : i32, i32
  }
  func.func @transform_6(%arg0: i32) -> (i32, i32) {
    %c0_i32 = arith.constant 0 : i32
    %c0_i32_0 = arith.constant 0 : i32
    %c0_i32_1 = arith.constant 0 : i32
    return %c0_i32, %c0_i32_0 : i32, i32
  }
  func.func @transform_7(%arg0: i32) -> (i32, i32) {
    %c0_i32 = arith.constant 0 : i32
    %c0_i32_0 = arith.constant 0 : i32
    return %arg0, %c0_i32 : i32, i32
  }
}

module attributes {stable_mosaic.version = 11 : i64} {
  func.func @_self_attn_sublayer_kernel(%arg0: i32, %arg1: memref<1x8x32xf32, #tpu.memory_space<vmem>>, %arg2: memref<1x8x8xf32, #tpu.memory_space<vmem>>, %arg3: memref<1x32xf32, #tpu.memory_space<vmem>>, %arg4: memref<1x32xf32, #tpu.memory_space<vmem>>, %arg5: memref<32x96xbf16, #tpu.memory_space<vmem>>, %arg6: memref<1x96xf32, #tpu.memory_space<vmem>>, %arg7: memref<32x32xbf16, #tpu.memory_space<vmem>>, %arg8: memref<1x32xf32, #tpu.memory_space<vmem>>, %arg9: memref<1x8x32xf32, #tpu.memory_space<vmem>>) attributes {dimension_semantics = [#tpu.dimension_semantics<parallel>], iteration_bounds = array<i64: 2>, scalar_prefetch = 0 : i64, scratch_operands = 0 : i64, tpu.core_type = #tpu.core_type<tc>, window_params = [{transform_indices = @transform_0, window_bounds = array<i64: 1, 8, 32>}, {transform_indices = @transform_1, window_bounds = array<i64: 1, 8, 8>}, {pipeline_mode = #tpu.pipeline_mode<synchronous>, transform_indices = @transform_2, window_bounds = array<i64: 1, 32>}, {pipeline_mode = #tpu.pipeline_mode<synchronous>, transform_indices = @transform_3, window_bounds = array<i64: 1, 32>}, {pipeline_mode = #tpu.pipeline_mode<synchronous>, transform_indices = @transform_4, window_bounds = array<i64: 32, 96>}, {pipeline_mode = #tpu.pipeline_mode<synchronous>, transform_indices = @transform_5, window_bounds = array<i64: 1, 96>}, {pipeline_mode = #tpu.pipeline_mode<synchronous>, transform_indices = @transform_6, window_bounds = array<i64: 32, 32>}, {pipeline_mode = #tpu.pipeline_mode<synchronous>, transform_indices = @transform_7, window_bounds = array<i64: 1, 32>}, {transform_indices = @transform_8, window_bounds = array<i64: 1, 8, 32>}]} {
    %c0 = arith.constant 0 : index
    %c0_0 = arith.constant 0 : index
    %c0_1 = arith.constant 0 : index
    %0 = vector.load %arg1[%c0, %c0_0, %c0_1] : memref<1x8x32xf32, #tpu.memory_space<vmem>>, vector<1x8x32xf32>
    %1 = vector.shape_cast %0 : vector<1x8x32xf32> to vector<8x32xf32>
    %c0_2 = arith.constant 0 : index
    %c0_3 = arith.constant 0 : index
    %2 = vector.load %arg3[%c0_2, %c0_3] : memref<1x32xf32, #tpu.memory_space<vmem>>, vector<1x32xf32>
    %c0_4 = arith.constant 0 : index
    %c0_5 = arith.constant 0 : index
    %3 = vector.load %arg4[%c0_4, %c0_5] : memref<1x32xf32, #tpu.memory_space<vmem>>, vector<1x32xf32>
    %cst = arith.constant dense<0.000000e+00> : vector<8xf32>
    %4 = vector.multi_reduction <add>, %1, %cst [1] : vector<8x32xf32> to vector<8xf32>
    %5 = vector.shape_cast %4 : vector<8xf32> to vector<8x1xf32>
    %cst_6 = arith.constant 3.200000e+01 : f32
    %6 = vector.broadcast %cst_6 : f32 to vector<8x1xf32>
    %7 = arith.divf %5, %6 : vector<8x1xf32>
    %8 = vector.broadcast %7 : vector<8x1xf32> to vector<8x32xf32>
    %9 = arith.subf %1, %8 : vector<8x32xf32>
    %10 = arith.mulf %9, %9 : vector<8x32xf32>
    %cst_7 = arith.constant dense<0.000000e+00> : vector<8xf32>
    %11 = vector.multi_reduction <add>, %10, %cst_7 [1] : vector<8x32xf32> to vector<8xf32>
    %12 = vector.shape_cast %11 : vector<8xf32> to vector<8x1xf32>
    %cst_8 = arith.constant 3.200000e+01 : f32
    %13 = vector.broadcast %cst_8 : f32 to vector<8x1xf32>
    %14 = arith.divf %12, %13 : vector<8x1xf32>
    %15 = vector.broadcast %7 : vector<8x1xf32> to vector<8x32xf32>
    %16 = arith.subf %1, %15 : vector<8x32xf32>
    %cst_9 = arith.constant 9.99999974E-6 : f32
    %17 = vector.broadcast %cst_9 : f32 to vector<8x1xf32>
    %18 = arith.addf %14, %17 : vector<8x1xf32>
    %19 = math.rsqrt %18 : vector<8x1xf32>
    %20 = vector.broadcast %19 : vector<8x1xf32> to vector<8x32xf32>
    %21 = arith.mulf %16, %20 : vector<8x32xf32>
    %22 = vector.broadcast %2 : vector<1x32xf32> to vector<8x32xf32>
    %23 = arith.mulf %21, %22 : vector<8x32xf32>
    %24 = vector.broadcast %3 : vector<1x32xf32> to vector<8x32xf32>
    %25 = arith.addf %23, %24 : vector<8x32xf32>
    %26 = arith.truncf %25 : vector<8x32xf32> to vector<8x32xbf16>
    %c0_10 = arith.constant 0 : index
    %c0_11 = arith.constant 0 : index
    %27 = vector.load %arg5[%c0_10, %c0_11] : memref<32x96xbf16, #tpu.memory_space<vmem>>, vector<32x96xbf16>
    %cst_12 = arith.constant dense<0.000000e+00> : vector<8x96xf32>
    %28 = tpu.matmul %26, %27, %cst_12 {dimension_numbers = #tpu.dot_dimension_numbers<[1], [0], [0], [1], [0, 0, 1, 1], [], []>} : vector<8x32xbf16>, vector<32x96xbf16>, vector<8x96xf32> -> vector<8x96xf32>
    %c0_13 = arith.constant 0 : index
    %c0_14 = arith.constant 0 : index
    %29 = vector.load %arg6[%c0_13, %c0_14] : memref<1x96xf32, #tpu.memory_space<vmem>>, vector<1x96xf32>
    %30 = vector.broadcast %29 : vector<1x96xf32> to vector<8x96xf32>
    %31 = arith.addf %28, %30 : vector<8x96xf32>
    %c0_15 = arith.constant 0 : index
    %c0_16 = arith.constant 0 : index
    %c0_17 = arith.constant 0 : index
    %32 = vector.load %arg2[%c0_15, %c0_16, %c0_17] : memref<1x8x8xf32, #tpu.memory_space<vmem>>, vector<1x8x8xf32>
    %33 = vector.shape_cast %32 : vector<1x8x8xf32> to vector<8x8xf32>
    %34 = vector.extract_strided_slice %31 {offsets = [0, 0], sizes = [8, 8], strides = [1, 1]} : vector<8x96xf32> to vector<8x8xf32>
    %35 = arith.truncf %34 : vector<8x8xf32> to vector<8x8xbf16>
    %36 = vector.extract_strided_slice %31 {offsets = [0, 32], sizes = [8, 8], strides = [1, 1]} : vector<8x96xf32> to vector<8x8xf32>
    %37 = arith.truncf %36 : vector<8x8xf32> to vector<8x8xbf16>
    %38 = vector.extract_strided_slice %31 {offsets = [0, 64], sizes = [8, 8], strides = [1, 1]} : vector<8x96xf32> to vector<8x8xf32>
    %39 = arith.truncf %38 : vector<8x8xf32> to vector<8x8xbf16>
    %cst_18 = arith.constant dense<0.000000e+00> : vector<8x8xf32>
    %40 = tpu.matmul %35, %37, %cst_18 {dimension_numbers = #tpu.dot_dimension_numbers<[1], [1], [0], [0], [0, 0, 1, 0], [], []>} : vector<8x8xbf16>, vector<8x8xbf16>, vector<8x8xf32> -> vector<8x8xf32>
    %cst_19 = arith.constant 0.353553385 : f32
    %41 = vector.broadcast %cst_19 : f32 to vector<8x8xf32>
    %42 = arith.mulf %40, %41 : vector<8x8xf32>
    %43 = arith.addf %42, %33 : vector<8x8xf32>
    %cst_20 = arith.constant dense<0xFF800000> : vector<8xf32>
    %44 = vector.multi_reduction <maximumf>, %43, %cst_20 [1] : vector<8x8xf32> to vector<8xf32>
    %45 = vector.shape_cast %44 : vector<8xf32> to vector<8x1xf32>
    %46 = vector.broadcast %45 : vector<8x1xf32> to vector<8x8xf32>
    %47 = arith.subf %43, %46 : vector<8x8xf32>
    %48 = math.exp %47 : vector<8x8xf32>
    %cst_21 = arith.constant dense<0.000000e+00> : vector<8xf32>
    %49 = vector.multi_reduction <add>, %48, %cst_21 [1] : vector<8x8xf32> to vector<8xf32>
    %50 = vector.shape_cast %49 : vector<8xf32> to vector<8x1xf32>
    %51 = tpu.reciprocal %50 {approx = true} : vector<8x1xf32> -> vector<8x1xf32>
    %52 = vector.broadcast %51 : vector<8x1xf32> to vector<8x8xf32>
    %53 = arith.mulf %48, %52 : vector<8x8xf32>
    %54 = arith.truncf %53 : vector<8x8xf32> to vector<8x8xbf16>
    %cst_22 = arith.constant dense<0.000000e+00> : vector<8x8xf32>
    %55 = tpu.matmul %54, %39, %cst_22 {dimension_numbers = #tpu.dot_dimension_numbers<[1], [0], [0], [1], [0, 0, 1, 1], [], []>} : vector<8x8xbf16>, vector<8x8xbf16>, vector<8x8xf32> -> vector<8x8xf32>
    %56 = vector.extract_strided_slice %31 {offsets = [0, 8], sizes = [8, 8], strides = [1, 1]} : vector<8x96xf32> to vector<8x8xf32>
    %57 = arith.truncf %56 : vector<8x8xf32> to vector<8x8xbf16>
    %58 = vector.extract_strided_slice %31 {offsets = [0, 40], sizes = [8, 8], strides = [1, 1]} : vector<8x96xf32> to vector<8x8xf32>
    %59 = arith.truncf %58 : vector<8x8xf32> to vector<8x8xbf16>
    %60 = vector.extract_strided_slice %31 {offsets = [0, 72], sizes = [8, 8], strides = [1, 1]} : vector<8x96xf32> to vector<8x8xf32>
    %61 = arith.truncf %60 : vector<8x8xf32> to vector<8x8xbf16>
    %cst_23 = arith.constant dense<0.000000e+00> : vector<8x8xf32>
    %62 = tpu.matmul %57, %59, %cst_23 {dimension_numbers = #tpu.dot_dimension_numbers<[1], [1], [0], [0], [0, 0, 1, 0], [], []>} : vector<8x8xbf16>, vector<8x8xbf16>, vector<8x8xf32> -> vector<8x8xf32>
    %cst_24 = arith.constant 0.353553385 : f32
    %63 = vector.broadcast %cst_24 : f32 to vector<8x8xf32>
    %64 = arith.mulf %62, %63 : vector<8x8xf32>
    %65 = arith.addf %64, %33 : vector<8x8xf32>
    %cst_25 = arith.constant dense<0xFF800000> : vector<8xf32>
    %66 = vector.multi_reduction <maximumf>, %65, %cst_25 [1] : vector<8x8xf32> to vector<8xf32>
    %67 = vector.shape_cast %66 : vector<8xf32> to vector<8x1xf32>
    %68 = vector.broadcast %67 : vector<8x1xf32> to vector<8x8xf32>
    %69 = arith.subf %65, %68 : vector<8x8xf32>
    %70 = math.exp %69 : vector<8x8xf32>
    %cst_26 = arith.constant dense<0.000000e+00> : vector<8xf32>
    %71 = vector.multi_reduction <add>, %70, %cst_26 [1] : vector<8x8xf32> to vector<8xf32>
    %72 = vector.shape_cast %71 : vector<8xf32> to vector<8x1xf32>
    %73 = tpu.reciprocal %72 {approx = true} : vector<8x1xf32> -> vector<8x1xf32>
    %74 = vector.broadcast %73 : vector<8x1xf32> to vector<8x8xf32>
    %75 = arith.mulf %70, %74 : vector<8x8xf32>
    %76 = arith.truncf %75 : vector<8x8xf32> to vector<8x8xbf16>
    %cst_27 = arith.constant dense<0.000000e+00> : vector<8x8xf32>
    %77 = tpu.matmul %76, %61, %cst_27 {dimension_numbers = #tpu.dot_dimension_numbers<[1], [0], [0], [1], [0, 0, 1, 1], [], []>} : vector<8x8xbf16>, vector<8x8xbf16>, vector<8x8xf32> -> vector<8x8xf32>
    %78 = vector.extract_strided_slice %31 {offsets = [0, 16], sizes = [8, 8], strides = [1, 1]} : vector<8x96xf32> to vector<8x8xf32>
    %79 = arith.truncf %78 : vector<8x8xf32> to vector<8x8xbf16>
    %80 = vector.extract_strided_slice %31 {offsets = [0, 48], sizes = [8, 8], strides = [1, 1]} : vector<8x96xf32> to vector<8x8xf32>
    %81 = arith.truncf %80 : vector<8x8xf32> to vector<8x8xbf16>
    %82 = vector.extract_strided_slice %31 {offsets = [0, 80], sizes = [8, 8], strides = [1, 1]} : vector<8x96xf32> to vector<8x8xf32>
    %83 = arith.truncf %82 : vector<8x8xf32> to vector<8x8xbf16>
    %cst_28 = arith.constant dense<0.000000e+00> : vector<8x8xf32>
    %84 = tpu.matmul %79, %81, %cst_28 {dimension_numbers = #tpu.dot_dimension_numbers<[1], [1], [0], [0], [0, 0, 1, 0], [], []>} : vector<8x8xbf16>, vector<8x8xbf16>, vector<8x8xf32> -> vector<8x8xf32>
    %cst_29 = arith.constant 0.353553385 : f32
    %85 = vector.broadcast %cst_29 : f32 to vector<8x8xf32>
    %86 = arith.mulf %84, %85 : vector<8x8xf32>
    %87 = arith.addf %86, %33 : vector<8x8xf32>
    %cst_30 = arith.constant dense<0xFF800000> : vector<8xf32>
    %88 = vector.multi_reduction <maximumf>, %87, %cst_30 [1] : vector<8x8xf32> to vector<8xf32>
    %89 = vector.shape_cast %88 : vector<8xf32> to vector<8x1xf32>
    %90 = vector.broadcast %89 : vector<8x1xf32> to vector<8x8xf32>
    %91 = arith.subf %87, %90 : vector<8x8xf32>
    %92 = math.exp %91 : vector<8x8xf32>
    %cst_31 = arith.constant dense<0.000000e+00> : vector<8xf32>
    %93 = vector.multi_reduction <add>, %92, %cst_31 [1] : vector<8x8xf32> to vector<8xf32>
    %94 = vector.shape_cast %93 : vector<8xf32> to vector<8x1xf32>
    %95 = tpu.reciprocal %94 {approx = true} : vector<8x1xf32> -> vector<8x1xf32>
    %96 = vector.broadcast %95 : vector<8x1xf32> to vector<8x8xf32>
    %97 = arith.mulf %92, %96 : vector<8x8xf32>
    %98 = arith.truncf %97 : vector<8x8xf32> to vector<8x8xbf16>
    %cst_32 = arith.constant dense<0.000000e+00> : vector<8x8xf32>
    %99 = tpu.matmul %98, %83, %cst_32 {dimension_numbers = #tpu.dot_dimension_numbers<[1], [0], [0], [1], [0, 0, 1, 1], [], []>} : vector<8x8xbf16>, vector<8x8xbf16>, vector<8x8xf32> -> vector<8x8xf32>
    %100 = vector.extract_strided_slice %31 {offsets = [0, 24], sizes = [8, 8], strides = [1, 1]} : vector<8x96xf32> to vector<8x8xf32>
    %101 = arith.truncf %100 : vector<8x8xf32> to vector<8x8xbf16>
    %102 = vector.extract_strided_slice %31 {offsets = [0, 56], sizes = [8, 8], strides = [1, 1]} : vector<8x96xf32> to vector<8x8xf32>
    %103 = arith.truncf %102 : vector<8x8xf32> to vector<8x8xbf16>
    %104 = vector.extract_strided_slice %31 {offsets = [0, 88], sizes = [8, 8], strides = [1, 1]} : vector<8x96xf32> to vector<8x8xf32>
    %105 = arith.truncf %104 : vector<8x8xf32> to vector<8x8xbf16>
    %cst_33 = arith.constant dense<0.000000e+00> : vector<8x8xf32>
    %106 = tpu.matmul %101, %103, %cst_33 {dimension_numbers = #tpu.dot_dimension_numbers<[1], [1], [0], [0], [0, 0, 1, 0], [], []>} : vector<8x8xbf16>, vector<8x8xbf16>, vector<8x8xf32> -> vector<8x8xf32>
    %cst_34 = arith.constant 0.353553385 : f32
    %107 = vector.broadcast %cst_34 : f32 to vector<8x8xf32>
    %108 = arith.mulf %106, %107 : vector<8x8xf32>
    %109 = arith.addf %108, %33 : vector<8x8xf32>
    %cst_35 = arith.constant dense<0xFF800000> : vector<8xf32>
    %110 = vector.multi_reduction <maximumf>, %109, %cst_35 [1] : vector<8x8xf32> to vector<8xf32>
    %111 = vector.shape_cast %110 : vector<8xf32> to vector<8x1xf32>
    %112 = vector.broadcast %111 : vector<8x1xf32> to vector<8x8xf32>
    %113 = arith.subf %109, %112 : vector<8x8xf32>
    %114 = math.exp %113 : vector<8x8xf32>
    %cst_36 = arith.constant dense<0.000000e+00> : vector<8xf32>
    %115 = vector.multi_reduction <add>, %114, %cst_36 [1] : vector<8x8xf32> to vector<8xf32>
    %116 = vector.shape_cast %115 : vector<8xf32> to vector<8x1xf32>
    %117 = tpu.reciprocal %116 {approx = true} : vector<8x1xf32> -> vector<8x1xf32>
    %118 = vector.broadcast %117 : vector<8x1xf32> to vector<8x8xf32>
    %119 = arith.mulf %114, %118 : vector<8x8xf32>
    %120 = arith.truncf %119 : vector<8x8xf32> to vector<8x8xbf16>
    %cst_37 = arith.constant dense<0.000000e+00> : vector<8x8xf32>
    %121 = tpu.matmul %120, %105, %cst_37 {dimension_numbers = #tpu.dot_dimension_numbers<[1], [0], [0], [1], [0, 0, 1, 1], [], []>} : vector<8x8xbf16>, vector<8x8xbf16>, vector<8x8xf32> -> vector<8x8xf32>
    %122 = tpu.concatenate %55, %77, %99, %121 in 1 : vector<8x8xf32>, vector<8x8xf32>, vector<8x8xf32>, vector<8x8xf32> -> vector<8x32xf32>
    %123 = arith.truncf %122 : vector<8x32xf32> to vector<8x32xbf16>
    %c0_38 = arith.constant 0 : index
    %c0_39 = arith.constant 0 : index
    %124 = vector.load %arg7[%c0_38, %c0_39] : memref<32x32xbf16, #tpu.memory_space<vmem>>, vector<32x32xbf16>
    %cst_40 = arith.constant dense<0.000000e+00> : vector<8x32xf32>
    %125 = tpu.matmul %123, %124, %cst_40 {dimension_numbers = #tpu.dot_dimension_numbers<[1], [0], [0], [1], [0, 0, 1, 1], [], []>} : vector<8x32xbf16>, vector<32x32xbf16>, vector<8x32xf32> -> vector<8x32xf32>
    %c0_41 = arith.constant 0 : index
    %c0_42 = arith.constant 0 : index
    %126 = vector.load %arg8[%c0_41, %c0_42] : memref<1x32xf32, #tpu.memory_space<vmem>>, vector<1x32xf32>
    %127 = vector.broadcast %126 : vector<1x32xf32> to vector<8x32xf32>
    %128 = arith.addf %125, %127 : vector<8x32xf32>
    %129 = arith.addf %1, %128 : vector<8x32xf32>
    %c0_43 = arith.constant 0 : index
    %c0_44 = arith.constant 0 : index
    %c0_45 = arith.constant 0 : index
    %130 = vector.load %arg9[%c0_43, %c0_44, %c0_45] : memref<1x8x32xf32, #tpu.memory_space<vmem>>, vector<1x8x32xf32>
    %131 = vector.shape_cast %130 : vector<1x8x32xf32> to vector<8x32xf32>
    %132 = vector.shape_cast %129 : vector<8x32xf32> to vector<1x8x32xf32>
    tpu.vector_store %arg9[%c0_43, %c0_44, %c0_45], %132 {strides = array<i32>} : memref<1x8x32xf32, #tpu.memory_space<vmem>>, vector<1x8x32xf32>,
    return
  }
  func.func @transform_0(%arg0: i32) -> (i32, i32, i32) {
    %c0_i32 = arith.constant 0 : i32
    %c0_i32_0 = arith.constant 0 : i32
    %c0_i32_1 = arith.constant 0 : i32
    return %arg0, %c0_i32, %c0_i32_0 : i32, i32, i32
  }
  func.func @transform_1(%arg0: i32) -> (i32, i32, i32) {
    %c0_i32 = arith.constant 0 : i32
    %c0_i32_0 = arith.constant 0 : i32
    %c0_i32_1 = arith.constant 0 : i32
    return %arg0, %c0_i32, %c0_i32_0 : i32, i32, i32
  }
  func.func @transform_2(%arg0: i32) -> (i32, i32) {
    %c0_i32 = arith.constant 0 : i32
    %c0_i32_0 = arith.constant 0 : i32
    %c0_i32_1 = arith.constant 0 : i32
    return %c0_i32, %c0_i32_0 : i32, i32
  }
  func.func @transform_3(%arg0: i32) -> (i32, i32) {
    %c0_i32 = arith.constant 0 : i32
    %c0_i32_0 = arith.constant 0 : i32
    %c0_i32_1 = arith.constant 0 : i32
    return %c0_i32, %c0_i32_0 : i32, i32
  }
  func.func @transform_4(%arg0: i32) -> (i32, i32) {
    %c0_i32 = arith.constant 0 : i32
    %c0_i32_0 = arith.constant 0 : i32
    %c0_i32_1 = arith.constant 0 : i32
    return %c0_i32, %c0_i32_0 : i32, i32
  }
  func.func @transform_5(%arg0: i32) -> (i32, i32) {
    %c0_i32 = arith.constant 0 : i32
    %c0_i32_0 = arith.constant 0 : i32
    %c0_i32_1 = arith.constant 0 : i32
    return %c0_i32, %c0_i32_0 : i32, i32
  }
  func.func @transform_6(%arg0: i32) -> (i32, i32) {
    %c0_i32 = arith.constant 0 : i32
    %c0_i32_0 = arith.constant 0 : i32
    %c0_i32_1 = arith.constant 0 : i32
    return %c0_i32, %c0_i32_0 : i32, i32
  }
  func.func @transform_7(%arg0: i32) -> (i32, i32) {
    %c0_i32 = arith.constant 0 : i32
    %c0_i32_0 = arith.constant 0 : i32
    %c0_i32_1 = arith.constant 0 : i32
    return %c0_i32, %c0_i32_0 : i32, i32
  }
  func.func @transform_8(%arg0: i32) -> (i32, i32, i32) {
    %c0_i32 = arith.constant 0 : i32
    %c0_i32_0 = arith.constant 0 : i32
    %c0_i32_1 = arith.constant 0 : i32
    return %arg0, %c0_i32, %c0_i32_0 : i32, i32, i32
  }
}

module attributes {stable_mosaic.version = 11 : i64} {
  func.func @_src_attn_sublayer_kernel(%arg0: i32, %arg1: memref<1x8x32xf32, #tpu.memory_space<vmem>>, %arg2: memref<1x16x32xf32, #tpu.memory_space<vmem>>, %arg3: memref<1x32xf32, #tpu.memory_space<vmem>>, %arg4: memref<1x32xf32, #tpu.memory_space<vmem>>, %arg5: memref<32x32xbf16, #tpu.memory_space<vmem>>, %arg6: memref<1x32xf32, #tpu.memory_space<vmem>>, %arg7: memref<32x64xbf16, #tpu.memory_space<vmem>>, %arg8: memref<1x64xf32, #tpu.memory_space<vmem>>, %arg9: memref<32x32xbf16, #tpu.memory_space<vmem>>, %arg10: memref<1x32xf32, #tpu.memory_space<vmem>>, %arg11: memref<1x8x32xf32, #tpu.memory_space<vmem>>) attributes {dimension_semantics = [#tpu.dimension_semantics<parallel>], iteration_bounds = array<i64: 2>, scalar_prefetch = 0 : i64, scratch_operands = 0 : i64, tpu.core_type = #tpu.core_type<tc>, window_params = [{transform_indices = @transform_0, window_bounds = array<i64: 1, 8, 32>}, {transform_indices = @transform_1, window_bounds = array<i64: 1, 16, 32>}, {pipeline_mode = #tpu.pipeline_mode<synchronous>, transform_indices = @transform_2, window_bounds = array<i64: 1, 32>}, {pipeline_mode = #tpu.pipeline_mode<synchronous>, transform_indices = @transform_3, window_bounds = array<i64: 1, 32>}, {pipeline_mode = #tpu.pipeline_mode<synchronous>, transform_indices = @transform_4, window_bounds = array<i64: 32, 32>}, {pipeline_mode = #tpu.pipeline_mode<synchronous>, transform_indices = @transform_5, window_bounds = array<i64: 1, 32>}, {pipeline_mode = #tpu.pipeline_mode<synchronous>, transform_indices = @transform_6, window_bounds = array<i64: 32, 64>}, {pipeline_mode = #tpu.pipeline_mode<synchronous>, transform_indices = @transform_7, window_bounds = array<i64: 1, 64>}, {pipeline_mode = #tpu.pipeline_mode<synchronous>, transform_indices = @transform_8, window_bounds = array<i64: 32, 32>}, {pipeline_mode = #tpu.pipeline_mode<synchronous>, transform_indices = @transform_9, window_bounds = array<i64: 1, 32>}, {transform_indices = @transform_10, window_bounds = array<i64: 1, 8, 32>}]} {
    %c0 = arith.constant 0 : index
    %c0_0 = arith.constant 0 : index
    %c0_1 = arith.constant 0 : index
    %0 = vector.load %arg1[%c0, %c0_0, %c0_1] : memref<1x8x32xf32, #tpu.memory_space<vmem>>, vector<1x8x32xf32>
    %1 = vector.shape_cast %0 : vector<1x8x32xf32> to vector<8x32xf32>
    %c0_2 = arith.constant 0 : index
    %c0_3 = arith.constant 0 : index
    %c0_4 = arith.constant 0 : index
    %2 = vector.load %arg2[%c0_2, %c0_3, %c0_4] : memref<1x16x32xf32, #tpu.memory_space<vmem>>, vector<1x16x32xf32>
    %3 = vector.shape_cast %2 : vector<1x16x32xf32> to vector<16x32xf32>
    %c0_5 = arith.constant 0 : index
    %c0_6 = arith.constant 0 : index
    %4 = vector.load %arg3[%c0_5, %c0_6] : memref<1x32xf32, #tpu.memory_space<vmem>>, vector<1x32xf32>
    %c0_7 = arith.constant 0 : index
    %c0_8 = arith.constant 0 : index
    %5 = vector.load %arg4[%c0_7, %c0_8] : memref<1x32xf32, #tpu.memory_space<vmem>>, vector<1x32xf32>
    %cst = arith.constant dense<0.000000e+00> : vector<8xf32>
    %6 = vector.multi_reduction <add>, %1, %cst [1] : vector<8x32xf32> to vector<8xf32>
    %7 = vector.shape_cast %6 : vector<8xf32> to vector<8x1xf32>
    %cst_9 = arith.constant 3.200000e+01 : f32
    %8 = vector.broadcast %cst_9 : f32 to vector<8x1xf32>
    %9 = arith.divf %7, %8 : vector<8x1xf32>
    %10 = vector.broadcast %9 : vector<8x1xf32> to vector<8x32xf32>
    %11 = arith.subf %1, %10 : vector<8x32xf32>
    %12 = arith.mulf %11, %11 : vector<8x32xf32>
    %cst_10 = arith.constant dense<0.000000e+00> : vector<8xf32>
    %13 = vector.multi_reduction <add>, %12, %cst_10 [1] : vector<8x32xf32> to vector<8xf32>
    %14 = vector.shape_cast %13 : vector<8xf32> to vector<8x1xf32>
    %cst_11 = arith.constant 3.200000e+01 : f32
    %15 = vector.broadcast %cst_11 : f32 to vector<8x1xf32>
    %16 = arith.divf %14, %15 : vector<8x1xf32>
    %17 = vector.broadcast %9 : vector<8x1xf32> to vector<8x32xf32>
    %18 = arith.subf %1, %17 : vector<8x32xf32>
    %cst_12 = arith.constant 9.99999974E-6 : f32
    %19 = vector.broadcast %cst_12 : f32 to vector<8x1xf32>
    %20 = arith.addf %16, %19 : vector<8x1xf32>
    %21 = math.rsqrt %20 : vector<8x1xf32>
    %22 = vector.broadcast %21 : vector<8x1xf32> to vector<8x32xf32>
    %23 = arith.mulf %18, %22 : vector<8x32xf32>
    %24 = vector.broadcast %4 : vector<1x32xf32> to vector<8x32xf32>
    %25 = arith.mulf %23, %24 : vector<8x32xf32>
    %26 = vector.broadcast %5 : vector<1x32xf32> to vector<8x32xf32>
    %27 = arith.addf %25, %26 : vector<8x32xf32>
    %28 = arith.truncf %27 : vector<8x32xf32> to vector<8x32xbf16>
    %c0_13 = arith.constant 0 : index
    %c0_14 = arith.constant 0 : index
    %29 = vector.load %arg5[%c0_13, %c0_14] : memref<32x32xbf16, #tpu.memory_space<vmem>>, vector<32x32xbf16>
    %cst_15 = arith.constant dense<0.000000e+00> : vector<8x32xf32>
    %30 = tpu.matmul %28, %29, %cst_15 {dimension_numbers = #tpu.dot_dimension_numbers<[1], [0], [0], [1], [0, 0, 1, 1], [], []>} : vector<8x32xbf16>, vector<32x32xbf16>, vector<8x32xf32> -> vector<8x32xf32>
    %c0_16 = arith.constant 0 : index
    %c0_17 = arith.constant 0 : index
    %31 = vector.load %arg6[%c0_16, %c0_17] : memref<1x32xf32, #tpu.memory_space<vmem>>, vector<1x32xf32>
    %32 = vector.broadcast %31 : vector<1x32xf32> to vector<8x32xf32>
    %33 = arith.addf %30, %32 : vector<8x32xf32>
    %34 = arith.truncf %3 : vector<16x32xf32> to vector<16x32xbf16>
    %c0_18 = arith.constant 0 : index
    %c0_19 = arith.constant 0 : index
    %35 = vector.load %arg7[%c0_18, %c0_19] : memref<32x64xbf16, #tpu.memory_space<vmem>>, vector<32x64xbf16>
    %cst_20 = arith.constant dense<0.000000e+00> : vector<16x64xf32>
    %36 = tpu.matmul %34, %35, %cst_20 {dimension_numbers = #tpu.dot_dimension_numbers<[1], [0], [0], [1], [0, 0, 1, 1], [], []>} : vector<16x32xbf16>, vector<32x64xbf16>, vector<16x64xf32> -> vector<16x64xf32>
    %c0_21 = arith.constant 0 : index
    %c0_22 = arith.constant 0 : index
    %37 = vector.load %arg8[%c0_21, %c0_22] : memref<1x64xf32, #tpu.memory_space<vmem>>, vector<1x64xf32>
    %38 = vector.broadcast %37 : vector<1x64xf32> to vector<16x64xf32>
    %39 = arith.addf %36, %38 : vector<16x64xf32>
    %40 = vector.extract_strided_slice %33 {offsets = [0, 0], sizes = [8, 8], strides = [1, 1]} : vector<8x32xf32> to vector<8x8xf32>
    %41 = arith.truncf %40 : vector<8x8xf32> to vector<8x8xbf16>
    %42 = vector.extract_strided_slice %39 {offsets = [0, 0], sizes = [16, 8], strides = [1, 1]} : vector<16x64xf32> to vector<16x8xf32>
    %43 = arith.truncf %42 : vector<16x8xf32> to vector<16x8xbf16>
    %44 = vector.extract_strided_slice %39 {offsets = [0, 32], sizes = [16, 8], strides = [1, 1]} : vector<16x64xf32> to vector<16x8xf32>
    %45 = arith.truncf %44 : vector<16x8xf32> to vector<16x8xbf16>
    %cst_23 = arith.constant dense<0.000000e+00> : vector<8x16xf32>
    %46 = tpu.matmul %41, %43, %cst_23 {dimension_numbers = #tpu.dot_dimension_numbers<[1], [1], [0], [0], [0, 0, 1, 0], [], []>} : vector<8x8xbf16>, vector<16x8xbf16>, vector<8x16xf32> -> vector<8x16xf32>
    %cst_24 = arith.constant 0.353553385 : f32
    %47 = vector.broadcast %cst_24 : f32 to vector<8x16xf32>
    %48 = arith.mulf %46, %47 : vector<8x16xf32>
    %cst_25 = arith.constant dense<0xFF800000> : vector<8xf32>
    %49 = vector.multi_reduction <maximumf>, %48, %cst_25 [1] : vector<8x16xf32> to vector<8xf32>
    %50 = vector.shape_cast %49 : vector<8xf32> to vector<8x1xf32>
    %51 = vector.broadcast %50 : vector<8x1xf32> to vector<8x16xf32>
    %52 = arith.subf %48, %51 : vector<8x16xf32>
    %53 = math.exp %52 : vector<8x16xf32>
    %cst_26 = arith.constant dense<0.000000e+00> : vector<8xf32>
    %54 = vector.multi_reduction <add>, %53, %cst_26 [1] : vector<8x16xf32> to vector<8xf32>
    %55 = vector.shape_cast %54 : vector<8xf32> to vector<8x1xf32>
    %56 = tpu.reciprocal %55 {approx = true} : vector<8x1xf32> -> vector<8x1xf32>
    %57 = vector.broadcast %56 : vector<8x1xf32> to vector<8x16xf32>
    %58 = arith.mulf %53, %57 : vector<8x16xf32>
    %59 = arith.truncf %58 : vector<8x16xf32> to vector<8x16xbf16>
    %cst_27 = arith.constant dense<0.000000e+00> : vector<8x8xf32>
    %60 = tpu.matmul %59, %45, %cst_27 {dimension_numbers = #tpu.dot_dimension_numbers<[1], [0], [0], [1], [0, 0, 1, 1], [], []>} : vector<8x16xbf16>, vector<16x8xbf16>, vector<8x8xf32> -> vector<8x8xf32>
    %61 = vector.extract_strided_slice %33 {offsets = [0, 8], sizes = [8, 8], strides = [1, 1]} : vector<8x32xf32> to vector<8x8xf32>
    %62 = arith.truncf %61 : vector<8x8xf32> to vector<8x8xbf16>
    %63 = vector.extract_strided_slice %39 {offsets = [0, 8], sizes = [16, 8], strides = [1, 1]} : vector<16x64xf32> to vector<16x8xf32>
    %64 = arith.truncf %63 : vector<16x8xf32> to vector<16x8xbf16>
    %65 = vector.extract_strided_slice %39 {offsets = [0, 40], sizes = [16, 8], strides = [1, 1]} : vector<16x64xf32> to vector<16x8xf32>
    %66 = arith.truncf %65 : vector<16x8xf32> to vector<16x8xbf16>
    %cst_28 = arith.constant dense<0.000000e+00> : vector<8x16xf32>
    %67 = tpu.matmul %62, %64, %cst_28 {dimension_numbers = #tpu.dot_dimension_numbers<[1], [1], [0], [0], [0, 0, 1, 0], [], []>} : vector<8x8xbf16>, vector<16x8xbf16>, vector<8x16xf32> -> vector<8x16xf32>
    %cst_29 = arith.constant 0.353553385 : f32
    %68 = vector.broadcast %cst_29 : f32 to vector<8x16xf32>
    %69 = arith.mulf %67, %68 : vector<8x16xf32>
    %cst_30 = arith.constant dense<0xFF800000> : vector<8xf32>
    %70 = vector.multi_reduction <maximumf>, %69, %cst_30 [1] : vector<8x16xf32> to vector<8xf32>
    %71 = vector.shape_cast %70 : vector<8xf32> to vector<8x1xf32>
    %72 = vector.broadcast %71 : vector<8x1xf32> to vector<8x16xf32>
    %73 = arith.subf %69, %72 : vector<8x16xf32>
    %74 = math.exp %73 : vector<8x16xf32>
    %cst_31 = arith.constant dense<0.000000e+00> : vector<8xf32>
    %75 = vector.multi_reduction <add>, %74, %cst_31 [1] : vector<8x16xf32> to vector<8xf32>
    %76 = vector.shape_cast %75 : vector<8xf32> to vector<8x1xf32>
    %77 = tpu.reciprocal %76 {approx = true} : vector<8x1xf32> -> vector<8x1xf32>
    %78 = vector.broadcast %77 : vector<8x1xf32> to vector<8x16xf32>
    %79 = arith.mulf %74, %78 : vector<8x16xf32>
    %80 = arith.truncf %79 : vector<8x16xf32> to vector<8x16xbf16>
    %cst_32 = arith.constant dense<0.000000e+00> : vector<8x8xf32>
    %81 = tpu.matmul %80, %66, %cst_32 {dimension_numbers = #tpu.dot_dimension_numbers<[1], [0], [0], [1], [0, 0, 1, 1], [], []>} : vector<8x16xbf16>, vector<16x8xbf16>, vector<8x8xf32> -> vector<8x8xf32>
    %82 = vector.extract_strided_slice %33 {offsets = [0, 16], sizes = [8, 8], strides = [1, 1]} : vector<8x32xf32> to vector<8x8xf32>
    %83 = arith.truncf %82 : vector<8x8xf32> to vector<8x8xbf16>
    %84 = vector.extract_strided_slice %39 {offsets = [0, 16], sizes = [16, 8], strides = [1, 1]} : vector<16x64xf32> to vector<16x8xf32>
    %85 = arith.truncf %84 : vector<16x8xf32> to vector<16x8xbf16>
    %86 = vector.extract_strided_slice %39 {offsets = [0, 48], sizes = [16, 8], strides = [1, 1]} : vector<16x64xf32> to vector<16x8xf32>
    %87 = arith.truncf %86 : vector<16x8xf32> to vector<16x8xbf16>
    %cst_33 = arith.constant dense<0.000000e+00> : vector<8x16xf32>
    %88 = tpu.matmul %83, %85, %cst_33 {dimension_numbers = #tpu.dot_dimension_numbers<[1], [1], [0], [0], [0, 0, 1, 0], [], []>} : vector<8x8xbf16>, vector<16x8xbf16>, vector<8x16xf32> -> vector<8x16xf32>
    %cst_34 = arith.constant 0.353553385 : f32
    %89 = vector.broadcast %cst_34 : f32 to vector<8x16xf32>
    %90 = arith.mulf %88, %89 : vector<8x16xf32>
    %cst_35 = arith.constant dense<0xFF800000> : vector<8xf32>
    %91 = vector.multi_reduction <maximumf>, %90, %cst_35 [1] : vector<8x16xf32> to vector<8xf32>
    %92 = vector.shape_cast %91 : vector<8xf32> to vector<8x1xf32>
    %93 = vector.broadcast %92 : vector<8x1xf32> to vector<8x16xf32>
    %94 = arith.subf %90, %93 : vector<8x16xf32>
    %95 = math.exp %94 : vector<8x16xf32>
    %cst_36 = arith.constant dense<0.000000e+00> : vector<8xf32>
    %96 = vector.multi_reduction <add>, %95, %cst_36 [1] : vector<8x16xf32> to vector<8xf32>
    %97 = vector.shape_cast %96 : vector<8xf32> to vector<8x1xf32>
    %98 = tpu.reciprocal %97 {approx = true} : vector<8x1xf32> -> vector<8x1xf32>
    %99 = vector.broadcast %98 : vector<8x1xf32> to vector<8x16xf32>
    %100 = arith.mulf %95, %99 : vector<8x16xf32>
    %101 = arith.truncf %100 : vector<8x16xf32> to vector<8x16xbf16>
    %cst_37 = arith.constant dense<0.000000e+00> : vector<8x8xf32>
    %102 = tpu.matmul %101, %87, %cst_37 {dimension_numbers = #tpu.dot_dimension_numbers<[1], [0], [0], [1], [0, 0, 1, 1], [], []>} : vector<8x16xbf16>, vector<16x8xbf16>, vector<8x8xf32> -> vector<8x8xf32>
    %103 = vector.extract_strided_slice %33 {offsets = [0, 24], sizes = [8, 8], strides = [1, 1]} : vector<8x32xf32> to vector<8x8xf32>
    %104 = arith.truncf %103 : vector<8x8xf32> to vector<8x8xbf16>
    %105 = vector.extract_strided_slice %39 {offsets = [0, 24], sizes = [16, 8], strides = [1, 1]} : vector<16x64xf32> to vector<16x8xf32>
    %106 = arith.truncf %105 : vector<16x8xf32> to vector<16x8xbf16>
    %107 = vector.extract_strided_slice %39 {offsets = [0, 56], sizes = [16, 8], strides = [1, 1]} : vector<16x64xf32> to vector<16x8xf32>
    %108 = arith.truncf %107 : vector<16x8xf32> to vector<16x8xbf16>
    %cst_38 = arith.constant dense<0.000000e+00> : vector<8x16xf32>
    %109 = tpu.matmul %104, %106, %cst_38 {dimension_numbers = #tpu.dot_dimension_numbers<[1], [1], [0], [0], [0, 0, 1, 0], [], []>} : vector<8x8xbf16>, vector<16x8xbf16>, vector<8x16xf32> -> vector<8x16xf32>
    %cst_39 = arith.constant 0.353553385 : f32
    %110 = vector.broadcast %cst_39 : f32 to vector<8x16xf32>
    %111 = arith.mulf %109, %110 : vector<8x16xf32>
    %cst_40 = arith.constant dense<0xFF800000> : vector<8xf32>
    %112 = vector.multi_reduction <maximumf>, %111, %cst_40 [1] : vector<8x16xf32> to vector<8xf32>
    %113 = vector.shape_cast %112 : vector<8xf32> to vector<8x1xf32>
    %114 = vector.broadcast %113 : vector<8x1xf32> to vector<8x16xf32>
    %115 = arith.subf %111, %114 : vector<8x16xf32>
    %116 = math.exp %115 : vector<8x16xf32>
    %cst_41 = arith.constant dense<0.000000e+00> : vector<8xf32>
    %117 = vector.multi_reduction <add>, %116, %cst_41 [1] : vector<8x16xf32> to vector<8xf32>
    %118 = vector.shape_cast %117 : vector<8xf32> to vector<8x1xf32>
    %119 = tpu.reciprocal %118 {approx = true} : vector<8x1xf32> -> vector<8x1xf32>
    %120 = vector.broadcast %119 : vector<8x1xf32> to vector<8x16xf32>
    %121 = arith.mulf %116, %120 : vector<8x16xf32>
    %122 = arith.truncf %121 : vector<8x16xf32> to vector<8x16xbf16>
    %cst_42 = arith.constant dense<0.000000e+00> : vector<8x8xf32>
    %123 = tpu.matmul %122, %108, %cst_42 {dimension_numbers = #tpu.dot_dimension_numbers<[1], [0], [0], [1], [0, 0, 1, 1], [], []>} : vector<8x16xbf16>, vector<16x8xbf16>, vector<8x8xf32> -> vector<8x8xf32>
    %124 = tpu.concatenate %60, %81, %102, %123 in 1 : vector<8x8xf32>, vector<8x8xf32>, vector<8x8xf32>, vector<8x8xf32> -> vector<8x32xf32>
    %125 = arith.truncf %124 : vector<8x32xf32> to vector<8x32xbf16>
    %c0_43 = arith.constant 0 : index
    %c0_44 = arith.constant 0 : index
    %126 = vector.load %arg9[%c0_43, %c0_44] : memref<32x32xbf16, #tpu.memory_space<vmem>>, vector<32x32xbf16>
    %cst_45 = arith.constant dense<0.000000e+00> : vector<8x32xf32>
    %127 = tpu.matmul %125, %126, %cst_45 {dimension_numbers = #tpu.dot_dimension_numbers<[1], [0], [0], [1], [0, 0, 1, 1], [], []>} : vector<8x32xbf16>, vector<32x32xbf16>, vector<8x32xf32> -> vector<8x32xf32>
    %c0_46 = arith.constant 0 : index
    %c0_47 = arith.constant 0 : index
    %128 = vector.load %arg10[%c0_46, %c0_47] : memref<1x32xf32, #tpu.memory_space<vmem>>, vector<1x32xf32>
    %129 = vector.broadcast %128 : vector<1x32xf32> to vector<8x32xf32>
    %130 = arith.addf %127, %129 : vector<8x32xf32>
    %131 = arith.addf %1, %130 : vector<8x32xf32>
    %c0_48 = arith.constant 0 : index
    %c0_49 = arith.constant 0 : index
    %c0_50 = arith.constant 0 : index
    %132 = vector.load %arg11[%c0_48, %c0_49, %c0_50] : memref<1x8x32xf32, #tpu.memory_space<vmem>>, vector<1x8x32xf32>
    %133 = vector.shape_cast %132 : vector<1x8x32xf32> to vector<8x32xf32>
    %134 = vector.shape_cast %131 : vector<8x32xf32> to vector<1x8x32xf32>
    tpu.vector_store %arg11[%c0_48, %c0_49, %c0_50], %134 {strides = array<i32>} : memref<1x8x32xf32, #tpu.memory_space<vmem>>, vector<1x8x32xf32>,
    return
  }
  func.func @transform_0(%arg0: i32) -> (i32, i32, i32) {
    %c0_i32 = arith.constant 0 : i32
    %c0_i32_0 = arith.constant 0 : i32
    %c0_i32_1 = arith.constant 0 : i32
    return %arg0, %c0_i32, %c0_i32_0 : i32, i32, i32
  }
  func.func @transform_1(%arg0: i32) -> (i32, i32, i32) {
    %c0_i32 = arith.constant 0 : i32
    %c0_i32_0 = arith.constant 0 : i32
    %c0_i32_1 = arith.constant 0 : i32
    return %arg0, %c0_i32, %c0_i32_0 : i32, i32, i32
  }
  func.func @transform_2(%arg0: i32) -> (i32, i32) {
    %c0_i32 = arith.constant 0 : i32
    %c0_i32_0 = arith.constant 0 : i32
    %c0_i32_1 = arith.constant 0 : i32
    return %c0_i32, %c0_i32_0 : i32, i32
  }
  func.func @transform_3(%arg0: i32) -> (i32, i32) {
    %c0_i32 = arith.constant 0 : i32
    %c0_i32_0 = arith.constant 0 : i32
    %c0_i32_1 = arith.constant 0 : i32
    return %c0_i32, %c0_i32_0 : i32, i32
  }
  func.func @transform_4(%arg0: i32) -> (i32, i32) {
    %c0_i32 = arith.constant 0 : i32
    %c0_i32_0 = arith.constant 0 : i32
    %c0_i32_1 = arith.constant 0 : i32
    return %c0_i32, %c0_i32_0 : i32, i32
  }
  func.func @transform_5(%arg0: i32) -> (i32, i32) {
    %c0_i32 = arith.constant 0 : i32
    %c0_i32_0 = arith.constant 0 : i32
    %c0_i32_1 = arith.constant 0 : i32
    return %c0_i32, %c0_i32_0 : i32, i32
  }
  func.func @transform_6(%arg0: i32) -> (i32, i32) {
    %c0_i32 = arith.constant 0 : i32
    %c0_i32_0 = arith.constant 0 : i32
    %c0_i32_1 = arith.constant 0 : i32
    return %c0_i32, %c0_i32_0 : i32, i32
  }
  func.func @transform_7(%arg0: i32) -> (i32, i32) {
    %c0_i32 = arith.constant 0 : i32
    %c0_i32_0 = arith.constant 0 : i32
    %c0_i32_1 = arith.constant 0 : i32
    return %c0_i32, %c0_i32_0 : i32, i32
  }
  func.func @transform_8(%arg0: i32) -> (i32, i32) {
    %c0_i32 = arith.constant 0 : i32
    %c0_i32_0 = arith.constant 0 : i32
    %c0_i32_1 = arith.constant 0 : i32
    return %c0_i32, %c0_i32_0 : i32, i32
  }
  func.func @transform_9(%arg0: i32) -> (i32, i32) {
    %c0_i32 = arith.constant 0 : i32
    %c0_i32_0 = arith.constant 0 : i32
    %c0_i32_1 = arith.constant 0 : i32
    return %c0_i32, %c0_i32_0 : i32, i32
  }
  func.func @transform_10(%arg0: i32) -> (i32, i32, i32) {
    %c0_i32 = arith.constant 0 : i32
    %c0_i32_0 = arith.constant 0 : i32
    %c0_i32_1 = arith.constant 0 : i32
    return %arg0, %c0_i32, %c0_i32_0 : i32, i32, i32
  }
}

module attributes {stable_mosaic.version = 11 : i64} {
  func.func @_head_kernel(%arg0: i32, %arg1: memref<16x32xf32, #tpu.memory_space<vmem>>, %arg2: memref<1x32xf32, #tpu.memory_space<vmem>>, %arg3: memref<1x32xf32, #tpu.memory_space<vmem>>, %arg4: memref<32x128xbf16, #tpu.memory_space<vmem>>, %arg5: memref<1x128xf32, #tpu.memory_space<vmem>>, %arg6: memref<16x128xf32, #tpu.memory_space<vmem>>) attributes {dimension_semantics = [#tpu.dimension_semantics<parallel>], iteration_bounds = array<i64: 1>, scalar_prefetch = 0 : i64, scratch_operands = 0 : i64, tpu.core_type = #tpu.core_type<tc>, window_params = [{transform_indices = @transform_0, window_bounds = array<i64: 16, 32>}, {pipeline_mode = #tpu.pipeline_mode<synchronous>, transform_indices = @transform_1, window_bounds = array<i64: 1, 32>}, {pipeline_mode = #tpu.pipeline_mode<synchronous>, transform_indices = @transform_2, window_bounds = array<i64: 1, 32>}, {pipeline_mode = #tpu.pipeline_mode<synchronous>, transform_indices = @transform_3, window_bounds = array<i64: 32, 128>}, {pipeline_mode = #tpu.pipeline_mode<synchronous>, transform_indices = @transform_4, window_bounds = array<i64: 1, 128>}, {transform_indices = @transform_5, window_bounds = array<i64: 16, 128>}]} {
    %c0 = arith.constant 0 : index
    %c0_0 = arith.constant 0 : index
    %0 = vector.load %arg1[%c0, %c0_0] : memref<16x32xf32, #tpu.memory_space<vmem>>, vector<16x32xf32>
    %c0_1 = arith.constant 0 : index
    %c0_2 = arith.constant 0 : index
    %1 = vector.load %arg2[%c0_1, %c0_2] : memref<1x32xf32, #tpu.memory_space<vmem>>, vector<1x32xf32>
    %c0_3 = arith.constant 0 : index
    %c0_4 = arith.constant 0 : index
    %2 = vector.load %arg3[%c0_3, %c0_4] : memref<1x32xf32, #tpu.memory_space<vmem>>, vector<1x32xf32>
    %cst = arith.constant dense<0.000000e+00> : vector<16xf32>
    %3 = vector.multi_reduction <add>, %0, %cst [1] : vector<16x32xf32> to vector<16xf32>
    %4 = vector.shape_cast %3 : vector<16xf32> to vector<16x1xf32>
    %cst_5 = arith.constant 3.200000e+01 : f32
    %5 = vector.broadcast %cst_5 : f32 to vector<16x1xf32>
    %6 = arith.divf %4, %5 : vector<16x1xf32>
    %7 = vector.broadcast %6 : vector<16x1xf32> to vector<16x32xf32>
    %8 = arith.subf %0, %7 : vector<16x32xf32>
    %9 = arith.mulf %8, %8 : vector<16x32xf32>
    %cst_6 = arith.constant dense<0.000000e+00> : vector<16xf32>
    %10 = vector.multi_reduction <add>, %9, %cst_6 [1] : vector<16x32xf32> to vector<16xf32>
    %11 = vector.shape_cast %10 : vector<16xf32> to vector<16x1xf32>
    %cst_7 = arith.constant 3.200000e+01 : f32
    %12 = vector.broadcast %cst_7 : f32 to vector<16x1xf32>
    %13 = arith.divf %11, %12 : vector<16x1xf32>
    %14 = vector.broadcast %6 : vector<16x1xf32> to vector<16x32xf32>
    %15 = arith.subf %0, %14 : vector<16x32xf32>
    %cst_8 = arith.constant 9.99999974E-6 : f32
    %16 = vector.broadcast %cst_8 : f32 to vector<16x1xf32>
    %17 = arith.addf %13, %16 : vector<16x1xf32>
    %18 = math.rsqrt %17 : vector<16x1xf32>
    %19 = vector.broadcast %18 : vector<16x1xf32> to vector<16x32xf32>
    %20 = arith.mulf %15, %19 : vector<16x32xf32>
    %21 = vector.broadcast %1 : vector<1x32xf32> to vector<16x32xf32>
    %22 = arith.mulf %20, %21 : vector<16x32xf32>
    %23 = vector.broadcast %2 : vector<1x32xf32> to vector<16x32xf32>
    %24 = arith.addf %22, %23 : vector<16x32xf32>
    %25 = arith.truncf %24 : vector<16x32xf32> to vector<16x32xbf16>
    %c0_9 = arith.constant 0 : index
    %c0_10 = arith.constant 0 : index
    %26 = vector.load %arg4[%c0_9, %c0_10] : memref<32x128xbf16, #tpu.memory_space<vmem>>, vector<32x128xbf16>
    %cst_11 = arith.constant dense<0.000000e+00> : vector<16x128xf32>
    %27 = tpu.matmul %25, %26, %cst_11 {dimension_numbers = #tpu.dot_dimension_numbers<[1], [0], [0], [1], [0, 0, 1, 1], [], []>} : vector<16x32xbf16>, vector<32x128xbf16>, vector<16x128xf32> -> vector<16x128xf32>
    %c0_12 = arith.constant 0 : index
    %c0_13 = arith.constant 0 : index
    %28 = vector.load %arg5[%c0_12, %c0_13] : memref<1x128xf32, #tpu.memory_space<vmem>>, vector<1x128xf32>
    %29 = vector.broadcast %28 : vector<1x128xf32> to vector<16x128xf32>
    %30 = arith.addf %27, %29 : vector<16x128xf32>
    %31 = arith.negf %30 : vector<16x128xf32>
    %32 = math.exp %31 : vector<16x128xf32>
    %cst_14 = arith.constant 1.000000e+00 : f32
    %33 = vector.broadcast %cst_14 : f32 to vector<16x128xf32>
    %34 = arith.addf %33, %32 : vector<16x128xf32>
    %35 = arith.divf %33, %34 : vector<16x128xf32>
    %c0_15 = arith.constant 0 : index
    %c0_16 = arith.constant 0 : index
    %36 = vector.load %arg6[%c0_15, %c0_16] : memref<16x128xf32, #tpu.memory_space<vmem>>, vector<16x128xf32>
    tpu.vector_store %arg6[%c0_15, %c0_16], %35 {strides = array<i32>} : memref<16x128xf32, #tpu.memory_space<vmem>>, vector<16x128xf32>,
    return
  }
  func.func @transform_0(%arg0: i32) -> (i32, i32) {
    %c0_i32 = arith.constant 0 : i32
    %c0_i32_0 = arith.constant 0 : i32
    return %arg0, %c0_i32 : i32, i32
  }
  func.func @transform_1(%arg0: i32) -> (i32, i32) {
    %c0_i32 = arith.constant 0 : i32
    %c0_i32_0 = arith.constant 0 : i32
    %c0_i32_1 = arith.constant 0 : i32
    return %c0_i32, %c0_i32_0 : i32, i32
  }
  func.func @transform_2(%arg0: i32) -> (i32, i32) {
    %c0_i32 = arith.constant 0 : i32
    %c0_i32_0 = arith.constant 0 : i32
    %c0_i32_1 = arith.constant 0 : i32
    return %c0_i32, %c0_i32_0 : i32, i32
  }
  func.func @transform_3(%arg0: i32) -> (i32, i32) {
    %c0_i32 = arith.constant 0 : i32
    %c0_i32_0 = arith.constant 0 : i32
    %c0_i32_1 = arith.constant 0 : i32
    return %c0_i32, %c0_i32_0 : i32, i32
  }
  func.func @transform_4(%arg0: i32) -> (i32, i32) {
    %c0_i32 = arith.constant 0 : i32
    %c0_i32_0 = arith.constant 0 : i32
    %c0_i32_1 = arith.constant 0 : i32
    return %c0_i32, %c0_i32_0 : i32, i32
  }
  func.func @transform_5(%arg0: i32) -> (i32, i32) {
    %c0_i32 = arith.constant 0 : i32
    %c0_i32_0 = arith.constant 0 : i32
    return %arg0, %c0_i32 : i32, i32
  }
}

module attributes {stable_mosaic.version = 11 : i64} {
  func.func @_head_kernel(%arg0: i32, %arg1: memref<16x32xf32, #tpu.memory_space<vmem>>, %arg2: memref<1x32xf32, #tpu.memory_space<vmem>>, %arg3: memref<1x32xf32, #tpu.memory_space<vmem>>, %arg4: memref<32x128xbf16, #tpu.memory_space<vmem>>, %arg5: memref<1x128xf32, #tpu.memory_space<vmem>>, %arg6: memref<16x128xf32, #tpu.memory_space<vmem>>) attributes {dimension_semantics = [#tpu.dimension_semantics<parallel>], iteration_bounds = array<i64: 1>, scalar_prefetch = 0 : i64, scratch_operands = 0 : i64, tpu.core_type = #tpu.core_type<tc>, window_params = [{transform_indices = @transform_0, window_bounds = array<i64: 16, 32>}, {pipeline_mode = #tpu.pipeline_mode<synchronous>, transform_indices = @transform_1, window_bounds = array<i64: 1, 32>}, {pipeline_mode = #tpu.pipeline_mode<synchronous>, transform_indices = @transform_2, window_bounds = array<i64: 1, 32>}, {pipeline_mode = #tpu.pipeline_mode<synchronous>, transform_indices = @transform_3, window_bounds = array<i64: 32, 128>}, {pipeline_mode = #tpu.pipeline_mode<synchronous>, transform_indices = @transform_4, window_bounds = array<i64: 1, 128>}, {transform_indices = @transform_5, window_bounds = array<i64: 16, 128>}]} {
    %c0 = arith.constant 0 : index
    %c0_0 = arith.constant 0 : index
    %0 = vector.load %arg1[%c0, %c0_0] : memref<16x32xf32, #tpu.memory_space<vmem>>, vector<16x32xf32>
    %c0_1 = arith.constant 0 : index
    %c0_2 = arith.constant 0 : index
    %1 = vector.load %arg2[%c0_1, %c0_2] : memref<1x32xf32, #tpu.memory_space<vmem>>, vector<1x32xf32>
    %c0_3 = arith.constant 0 : index
    %c0_4 = arith.constant 0 : index
    %2 = vector.load %arg3[%c0_3, %c0_4] : memref<1x32xf32, #tpu.memory_space<vmem>>, vector<1x32xf32>
    %cst = arith.constant dense<0.000000e+00> : vector<16xf32>
    %3 = vector.multi_reduction <add>, %0, %cst [1] : vector<16x32xf32> to vector<16xf32>
    %4 = vector.shape_cast %3 : vector<16xf32> to vector<16x1xf32>
    %cst_5 = arith.constant 3.200000e+01 : f32
    %5 = vector.broadcast %cst_5 : f32 to vector<16x1xf32>
    %6 = arith.divf %4, %5 : vector<16x1xf32>
    %7 = vector.broadcast %6 : vector<16x1xf32> to vector<16x32xf32>
    %8 = arith.subf %0, %7 : vector<16x32xf32>
    %9 = arith.mulf %8, %8 : vector<16x32xf32>
    %cst_6 = arith.constant dense<0.000000e+00> : vector<16xf32>
    %10 = vector.multi_reduction <add>, %9, %cst_6 [1] : vector<16x32xf32> to vector<16xf32>
    %11 = vector.shape_cast %10 : vector<16xf32> to vector<16x1xf32>
    %cst_7 = arith.constant 3.200000e+01 : f32
    %12 = vector.broadcast %cst_7 : f32 to vector<16x1xf32>
    %13 = arith.divf %11, %12 : vector<16x1xf32>
    %14 = vector.broadcast %6 : vector<16x1xf32> to vector<16x32xf32>
    %15 = arith.subf %0, %14 : vector<16x32xf32>
    %cst_8 = arith.constant 9.99999974E-6 : f32
    %16 = vector.broadcast %cst_8 : f32 to vector<16x1xf32>
    %17 = arith.addf %13, %16 : vector<16x1xf32>
    %18 = math.rsqrt %17 : vector<16x1xf32>
    %19 = vector.broadcast %18 : vector<16x1xf32> to vector<16x32xf32>
    %20 = arith.mulf %15, %19 : vector<16x32xf32>
    %21 = vector.broadcast %1 : vector<1x32xf32> to vector<16x32xf32>
    %22 = arith.mulf %20, %21 : vector<16x32xf32>
    %23 = vector.broadcast %2 : vector<1x32xf32> to vector<16x32xf32>
    %24 = arith.addf %22, %23 : vector<16x32xf32>
    %25 = arith.truncf %24 : vector<16x32xf32> to vector<16x32xbf16>
    %c0_9 = arith.constant 0 : index
    %c0_10 = arith.constant 0 : index
    %26 = vector.load %arg4[%c0_9, %c0_10] : memref<32x128xbf16, #tpu.memory_space<vmem>>, vector<32x128xbf16>
    %cst_11 = arith.constant dense<0.000000e+00> : vector<16x128xf32>
    %27 = tpu.matmul %25, %26, %cst_11 {dimension_numbers = #tpu.dot_dimension_numbers<[1], [0], [0], [1], [0, 0, 1, 1], [], []>} : vector<16x32xbf16>, vector<32x128xbf16>, vector<16x128xf32> -> vector<16x128xf32>
    %c0_12 = arith.constant 0 : index
    %c0_13 = arith.constant 0 : index
    %28 = vector.load %arg5[%c0_12, %c0_13] : memref<1x128xf32, #tpu.memory_space<vmem>>, vector<1x128xf32>
    %29 = vector.broadcast %28 : vector<1x128xf32> to vector<16x128xf32>
    %30 = arith.addf %27, %29 : vector<16x128xf32>
    %c0_14 = arith.constant 0 : index
    %c0_15 = arith.constant 0 : index
    %31 = vector.load %arg6[%c0_14, %c0_15] : memref<16x128xf32, #tpu.memory_space<vmem>>, vector<16x128xf32>
    tpu.vector_store %arg6[%c0_14, %c0_15], %30 {strides = array<i32>} : memref<16x128xf32, #tpu.memory_space<vmem>>, vector<16x128xf32>,
    return
  }
  func.func @transform_0(%arg0: i32) -> (i32, i32) {
    %c0_i32 = arith.constant 0 : i32
    %c0_i32_0 = arith.constant 0 : i32
    return %arg0, %c0_i32 : i32, i32
  }
  func.func @transform_1(%arg0: i32) -> (i32, i32) {
    %c0_i32 = arith.constant 0 : i32
    %c0_i32_0 = arith.constant 0 : i32
    %c0_i32_1 = arith.constant 0 : i32
    return %c0_i32, %c0_i32_0 : i32, i32
  }
  func.func @transform_2(%arg0: i32) -> (i32, i32) {
    %c0_i32 = arith.constant 0 : i32
    %c0_i32_0 = arith.constant 0 : i32
    %c0_i32_1 = arith.constant 0 : i32
    return %c0_i32, %c0_i32_0 : i32, i32
  }
  func.func @transform_3(%arg0: i32) -> (i32, i32) {
    %c0_i32 = arith.constant 0 : i32
    %c0_i32_0 = arith.constant 0 : i32
    %c0_i32_1 = arith.constant 0 : i32
    return %c0_i32, %c0_i32_0 : i32, i32
  }
  func.func @transform_4(%arg0: i32) -> (i32, i32) {
    %c0_i32 = arith.constant 0 : i32
    %c0_i32_0 = arith.constant 0 : i32
    %c0_i32_1 = arith.constant 0 : i32
    return %c0_i32, %c0_i32_0 : i32, i32
  }
  func.func @transform_5(%arg0: i32) -> (i32, i32) {
    %c0_i32 = arith.constant 0 : i32
    %c0_i32_0 = arith.constant 0 : i32
    return %arg0, %c0_i32 : i32, i32
  }
}

</mosaic_0001>

<bundles_post_ra>
// kernel: _lambda_.14
= control target key start
LH: loop header
LB: loop body
LE: loop exit
PB: predicated region body
PF: predicated region fallthrough
CT: control target
= control target key end

     0   :  { %s908_s27 = smov 0   ;;  %s1006_s0 = inlined_call_operand.vmem [shape: f32[2,8,32], index: 0, kind: input, shape index: {}]   ;;  %s1007_s1 = inlined_call_operand.vmem [shape: f32[2,8,8], index: 1, kind: input, shape index: {}]   ;;  %s1008_s2 = inlined_call_operand.vmem [shape: f32[1,32], index: 2, kind: input, shape index: {}]   ;;  %s1009_s3 = inlined_call_operand.vmem [shape: f32[1,32], index: 3, kind: input, shape index: {}]   ;;  %s1010_s4 = inlined_call_operand.vmem [shape: bf16[32,96], index: 4, kind: input, shape index: {}]   ;;  %s1011_s5 = inlined_call_operand.vmem [shape: f32[1,96], index: 5, kind: input, shape index: {}]   ;;  %s1012_s6 = inlined_call_operand.vmem [shape: bf16[32,32], index: 6, kind: input, shape index: {}]   ;;  %s1013_s7 = inlined_call_operand.vmem [shape: f32[1,32], index: 7, kind: input, shape index: {}]   ;;  %s1014_s8 = inlined_call_operand.vmem [shape: f32[2,8,32], index: 8, kind: output, shape index: {}]  }
   0x1 LB: > { %s753_s28 = sadd.s32 4294967295, %s846_s27   ;;  %p757_p0 = scmp.ge.s32.totalorder %s846_s27, 1  ;;  %s846_s27 = sphi %s908_s27, %s18_s27  }
   0x2   : > { %p270_p1 = scmp.lt.s32.totalorder %s846_s27, 3 }
   0x4   : > { %p271_p2 = pnand %p757_p0, %p270_p1 }
   0x5   : > { %p306_p3 = scmp.lt.s32.totalorder (!%p271_p2), %s753_s28, 1  ;;  %s849_s21 = smov (!%p271_p2), 104  }
   0x6   : > { %274 = sbr.rel (%p271_p2) target bundleno = 1341 (0x53d), region = 52  ;;  %s850_s22 = smov (!%p271_p2), 120  }
   0x7   : > { %s851_s23 = smov (!%p271_p2), 96   ;;  %s852_s24 = smov (!%p271_p2), 72  }
   0x8   : > { %s853_s25 = smov (!%p271_p2), 88   ;;  %s854_s26 = smov (!%p271_p2), 112  }
   0x9   : > { %s856_s11 = smov (!%p271_p2), 64   ;;  %s857_s12 = smov (!%p271_p2), 56  }
   0xa   : > { %s858_s13 = smov (!%p271_p2), 40   ;;  %s859_s14 = smov (!%p271_p2), 48  }
   0xb   : > { %s1016_s28 = smov (!%p306_p3, %s753_s28), 1  ;;  %vm322_vm0 = vcmask 261120   ;;  %v848_v2 = vmov 32.0   ;;  %v790_v14 = vld [vmem:[%s1010_s4 + $0x8] sm:$0xff]  ;;  %v789_v15 = vld [vmem:[%s1010_s4] sm:$0xff]  ;;  %vm402_vm5 = vcmask 64512  }
   0xc   : > { %s916_s29 = sshll.u32 %s1016_s28, 3  ;;  %820 = vrcp.f32 %v848_v2  ;;  %390 = vmatpush.bf16.msra.mxu0 %v790_v14  ;;  %v816_v25 = vld [vmem:[%s1008_s2] ss:$0 sm:$0xff]  ;;  %s855_s28 = smov 80   ;;  %vm441_vm6 = vcmask 1043456   ;;  %vm645_vm7 = vcmask 130048  }
   0xd   : > { %s309_s10 = scalar_lea.vmem %s1006_s0, %s916_s29  ;;  %v817_v28 = vld [vmem:[%s1009_s3] ss:$0 sm:$0xff]  ;;  %s860_s15 = smov 8   ;;  %vm647_vm8 = vcmask 195584  }
   0xe   : > { %v922_v0 = vld [vmem:[%s309_s10] sm:$0xff]  ;;  %s313_s10 = scalar_lea.vmem %s1007_s1, %s916_s29  ;;  %s861_s16 = smov 24  }
   0xf   : > { %v323_v1 = vsel %vm322_vm0, %v922_v0, 0.0  ;;  %v818_v32 = vld [vmem:[%s1011_s5] ss:$0 sm:$0xff]  ;;  %s862_s17 = smov 16  }
  0x10   : > { %324 = vadd.xlane.f32.xlu0 %v323_v1  ;;  %391 = vmatpush.bf16.msra.mxu0 %v789_v15  ;;  %v397_v49 = vld [vmem:[%s313_s10] sm:$0xff] }
  0x12   : > { %v821_v3 = vpop.eup %820 }
  0x13   : > { %v327_v4 = vmul.f32 32.0, %v821_v3  ;;  %vm331_vm1 = vweird.f32 %v821_v3 }
  0x15   : > { %v328_v5 = vsub.f32 1.0, %v327_v4 }
  0x17   : > { %v329_v6 = vmul.f32 %v821_v3, %v328_v5 }
  0x19   : > { %v330_v7 = vadd.f32 %v821_v3, %v329_v6 }
  0x1b   : > { %v332_v8 = vsel %vm331_vm1, %v821_v3, %v330_v7 }
  0x83   : > { %v325_v9 = vpop.xlane.xlu0 %324 }
  0x84   : > { %v333_v10 = vmul.f32 %v332_v8, %v325_v9 }
  0x86   : > { %v334_v11 = vsub.f32 %v922_v0, %v333_v10 }
  0x88   : > { %v335_v12 = vmul.f32 %v334_v11, %v334_v11 }
  0x8a   : > { %v336_v13 = vsel %vm322_vm0, %v335_v12, 0.0 }
  0x8b   : > { %337 = vadd.xlane.f32.xlu0 %v336_v13 }
  0xfe   : > { %v338_v16 = vpop.xlane.xlu0 %337 }
  0xff   : > { %v339_v17 = vmul.f32 %v338_v16, %v332_v8 }
 0x101   : > { %v340_v18 = vadd.f32 1e-05, %v339_v17 }
 0x103   : > { %822 = vrsqrt.f32 %v340_v18  ;;  %vm347_vm3 = vweird.f32 %v340_v18 }
 0x109   : > { %v823_v19 = vpop.eup %822 }
 0x10a   : > { %v342_v20 = vmul.f32 %v823_v19, %v340_v18  ;;  %vm348_vm2 = vweird.f32 %v823_v19 }
 0x10b   : > { %vm349_vm4 = vmor %vm347_vm3, %vm348_vm2 }
 0x10c   : > { %v343_v21 = vmul.f32 %v823_v19, %v342_v20 }
 0x10e   : > { %v344_v22 = vmul.f32 0.5, %v343_v21 }
 0x110   : > { %v345_v23 = vsub.f32 1.5, %v344_v22 }
 0x112   : > { %v346_v24 = vmul.f32 %v823_v19, %v345_v23 }
 0x114   : > { %v350_v26 = vsel %vm349_vm4, %v823_v19, %v346_v24 }
 0x115   : > { %v351_v27 = vmul.f32 %v350_v26, %v334_v11 }
 0x117   : > { %v355_v29 = vmul.f32 %v816_v25, %v351_v27 }
 0x119   : > { %v359_v30 = vadd.f32 %v817_v28, %v355_v29 }
 0x11b   : > { %v360_v31 = vpack.c.bf16 %v359_v30, %v359_v30 }
 0x11d   : > { %769 = vmatmul.msk.bf16.vlgmr.msra.gmra.mxu0 %vm322_vm0, %v360_v31 }
 0x19a   : > { %v393_v33 = vpop.f32.mrf.mxu0 }
 0x19b   : > { %v394_v34 = vadd.f32 %v818_v32, %v393_v33 }
 0x19d   : > { %v944_v35 = vpack.c.bf16 %v394_v34, %v394_v34 }
 0x19f   : > { %574 = vrot.lane.b32.xlu0 %v944_v35, %s849_s21  ;;  %458 = vrot.lane.b32.xlu2 %v944_v35, %s850_s22 }
 0x1a0   : > { %400 = vrot.lane.b32.xlu1 %v944_v35, %s851_s23 }
 0x1a2   : > { %v395_v36 = vpop.f32.mrf.mxu0 }
 0x1a7   : > { %576 = vrot.lane.b32.xlu2 %v944_v35, %s852_s24 }
 0x1a8   : > { %460 = vrot.lane.b32.xlu1 %v944_v35, %s853_s25 }
 0x1af   : > { %516 = vrot.lane.b32.xlu2 %v944_v35, %s854_s26  ;;  %s317_s26 = scalar_lea.vmem %s1014_s8, %s916_s29 }
 0x1b0   : > { %518 = vrot.lane.b32.xlu1 %v944_v35, %s855_s28 }
 0x1f9   : > { %v459_v37 = vpop.permute.xlu2 %458 }
 0x201   : > { %v577_v40 = vpop.permute.xlu2 %576 }
 0x202   : > { %v582_v43 = vsel %vm402_vm5, %v577_v40, 0 }
 0x209   : > { %v517_v46 = vpop.permute.xlu2 %516 }
 0x211   : > { %v575_v47 = vpop.permute.xlu0 %574 }
 0x212   : > { %v401_v38 = vpop.permute.xlu1 %400 }
 0x213   : > { %v407_v39 = vsel %vm402_vm5, %v401_v38, 0 }
 0x214   : > { %416 = vmatpush.bf16.xpose.msra.mxu1 %v407_v39 }
 0x21a   : > { %v461_v41 = vpop.permute.xlu1 %460 }
 0x21b   : > { %770 = vmatmul.msk.bf16.vlgmr.msra.gmra.mxu1 %vm402_vm5, %v944_v35  ;;  %v466_v42 = vsel %vm402_vm5, %v461_v41, 0 }
 0x21c   : > { %475 = vmatpush.bf16.xpose.msra.mxu3 %v466_v42 }
 0x222   : > { %v519_v44 = vpop.permute.xlu1 %518 }
 0x223   : > { %772 = vmatmul.msk.bf16.vlgmr.msra.gmra.mxu3 %vm402_vm5, %v459_v37  ;;  %v524_v45 = vsel %vm402_vm5, %v519_v44, 0 }
 0x224   : > { %591 = vmatpush.bf16.xpose.msrb.mxu3 %v582_v43  ;;  %533 = vmatpush.bf16.xpose.msrb.mxu0 %v524_v45 }
 0x22b   : > { %774 = vmatmul.msk.bf16.vlgmr.msrb.gmra.mxu0 %vm402_vm5, %v517_v46 }
 0x233   : > { %776 = vmatmul.msk.bf16.vlgmr.msrb.gmra.mxu3 %vm402_vm5, %v575_v47 }
 0x298   : > { %v418_v48 = vpop.f32.mrf.mxu1 }
 0x299   : > { %v422_v50 = vmul.f32 0.35355338, %v418_v48 }
 0x29b   : > { %v423_v51 = vadd.f32 %v422_v50, %v397_v49 }
 0x29d   : > { %v424_v52 = vsel %vm402_vm5, %v423_v51, -inf }
 0x29e   : > { %425 = vmax.xlane.f32.xlu1 %v424_v52 }
 0x2a0   : > { %v420_v53 = vpop.f32.mrf.mxu1 }
 0x2a6   : > { %v477_v54 = vpop.f32.mrf.mxu3 }
 0x2a7   : > { %v481_v55 = vmul.f32 0.35355338, %v477_v54 }
 0x2a8   : > { %v535_v56 = vpop.f32.mrf.mxu0 }
 0x2a9   : > { %v482_v57 = vadd.f32 %v481_v55, %v397_v49  ;;  %v539_v58 = vmul.f32 0.35355338, %v535_v56 }
 0x2ab   : > { %v483_v59 = vsel %vm402_vm5, %v482_v57, -inf  ;;  %v540_v61 = vadd.f32 %v539_v58, %v397_v49  ;;  %v792_v58 = vld [vmem:[%s1012_s6 + $0x8] sm:$0xff] }
 0x2ac   : > { %484 = vmax.xlane.f32.xlu2 %v483_v59  ;;  %679 = vmatpush.bf16.msra.mxu0 %v792_v58  ;;  %v791_v59 = vld [vmem:[%s1012_s6] sm:$0xff] }
 0x2ad   : > { %v541_v63 = vsel %vm402_vm5, %v540_v61, -inf }
 0x2ae   : > { %v479_v60 = vpop.f32.mrf.mxu3 }
 0x2b0   : > { %v537_v62 = vpop.f32.mrf.mxu0  ;;  %680 = vmatpush.bf16.msra.mxu0 %v791_v59 }
 0x2b4   : > { %542 = vmax.xlane.f32.xlu2 %v541_v63 }
 0x2b6   : > { %v593_v1 = vpop.f32.mrf.mxu3 }
 0x2b7   : > { %v597_v2 = vmul.f32 0.35355338, %v593_v1 }
 0x2b9   : > { %v598_v3 = vadd.f32 %v597_v2, %v397_v49 }
 0x2bb   : > { %v599_v4 = vsel %vm402_vm5, %v598_v3, -inf }
 0x2bc   : > { %600 = vmax.xlane.f32.xlu0 %v599_v4  ;;  %v819_v4 = vld [vmem:[%s1013_s7] ss:$0 sm:$0xff] }
 0x2be   : > { %v595_v5 = vpop.f32.mrf.mxu3 }
 0x2cc   : > { %436 = vrot.lane.b32.xlu2 %v944_v35, %s856_s11 }
 0x2d0   : > { %495 = vrot.lane.b32.xlu0 %v944_v35, %s857_s12 }
 0x2d4   : > { %611 = vrot.lane.b32.xlu2 %v944_v35, %s858_s13 }
 0x2d8   : > { %553 = vrot.lane.b32.xlu0 %v944_v35, %s859_s14 }
 0x311   : > { %v426_v6 = vpop.xlane.xlu1 %425 }
 0x312   : > { %v427_v7 = vsub.f32 %v423_v51, %v426_v6 }
 0x314   : > { %v428_v8 = vmul.f32 1.442695, %v427_v7 }
 0x316   : > { %824 = vpow2.f32 %v428_v8 }
 0x31c   : > { %v825_v9 = vpop.eup %824 }
 0x31d   : > { %v430_v10 = vsel %vm402_vm5, %v825_v9, 0.0 }
 0x31e   : > { %431 = vadd.xlane.f32.xlu1 %v430_v10 }
 0x31f   : > { %v485_v11 = vpop.xlane.xlu2 %484 }
 0x320   : > { %v486_v12 = vsub.f32 %v482_v57, %v485_v11 }
 0x322   : > { %v487_v13 = vmul.f32 1.442695, %v486_v12 }
 0x324   : > { %826 = vpow2.f32 %v487_v13 }
 0x327   : > { %v543_v14 = vpop.xlane.xlu2 %542 }
 0x328   : > { %v544_v21 = vsub.f32 %v540_v61, %v543_v14 }
 0x32a   : > { %v827_v15 = vpop.eup %826  ;;  %v545_v23 = vmul.f32 1.442695, %v544_v21 }
 0x32b   : > { %v489_v16 = vsel %vm402_vm5, %v827_v15, 0.0 }
 0x32c   : > { %490 = vadd.xlane.f32.xlu1 %v489_v16 }
 0x32f   : > { %v601_v17 = vpop.xlane.xlu0 %600  ;;  %v437_v18 = vpop.permute.xlu2 %436 }
 0x330   : > { %v602_v19 = vsub.f32 %v598_v3, %v601_v17  ;;  %v443_v20 = vsel %vm441_vm6, %v437_v18, 0 }
 0x331   : > { %452 = vmatpush.bf16.msra.mxu2 %v443_v20 }
 0x332   : > { %v603_v22 = vmul.f32 1.442695, %v602_v19 }
 0x334   : > { %828 = vpow2.f32 %v603_v22 }
 0x335   : > { %830 = vpow2.f32 %v545_v23 }
 0x337   : > { %v612_v35 = vpop.permute.xlu2 %611 }
 0x338   : > { %v617_v37 = vsel %vm441_vm6, %v612_v35, 0 }
 0x33a   : > { %v829_v24 = vpop.eup %828 }
 0x33b   : > { %v605_v25 = vsel %vm402_vm5, %v829_v24, 0.0  ;;  %v831_v26 = vpop.eup %830 }
 0x33c   : > { %606 = vadd.xlane.f32.xlu1 %v605_v25  ;;  %v547_v29 = vsel %vm402_vm5, %v831_v26, 0.0 }
 0x342   : > { %v496_v27 = vpop.permute.xlu0 %495 }
 0x343   : > { %v501_v28 = vsel %vm441_vm6, %v496_v27, 0 }
 0x344   : > { %510 = vmatpush.bf16.msrb.mxu2 %v501_v28  ;;  %548 = vadd.xlane.f32.xlu1 %v547_v29 }
 0x34a   : > { %v554_v30 = vpop.permute.xlu0 %553 }
 0x34b   : > { %v559_v31 = vsel %vm441_vm6, %v554_v30, 0 }
 0x34c   : > { %568 = vmatpush.bf16.msrb.mxu1 %v559_v31 }
 0x391   : > { %v432_v32 = vpop.xlane.xlu1 %431 }
 0x392   : > { %832 = vrcp.f32 %v432_v32 }
 0x398   : > { %v833_v33 = vpop.eup %832 }
 0x399   : > { %v434_v34 = vmul.f32 %v833_v33, %v825_v9 }
 0x39b   : > { %v435_v36 = vpack.c.bf16 %v434_v34, %v434_v34 }
 0x39d   : > { %771 = vmatmul.msk.bf16.vlgmr.msra.gmra.mxu2 %vm402_vm5, %v435_v36 }
 0x39e   : > { %626 = vmatpush.bf16.msra.mxu2 %v617_v37 }
 0x39f   : > { %v491_v38 = vpop.xlane.xlu1 %490 }
 0x3a0   : > { %834 = vrcp.f32 %v491_v38 }
 0x3a6   : > { %v835_v39 = vpop.eup %834 }
 0x3a7   : > { %v493_v40 = vmul.f32 %v835_v39, %v827_v15 }
 0x3a9   : > { %v494_v41 = vpack.c.bf16 %v493_v40, %v493_v40 }
 0x3ad   : > { %773 = vmatmul.msk.bf16.vlgmr.msrb.gmra.mxu2 %vm402_vm5, %v494_v41 }
 0x3af   : > { %v607_v42 = vpop.xlane.xlu1 %606 }
 0x3b0   : > { %836 = vrcp.f32 %v607_v42 }
 0x3b6   : > { %v837_v43 = vpop.eup %836 }
 0x3b7   : > { %v609_v44 = vmul.f32 %v837_v43, %v829_v24  ;;  %v549_v45 = vpop.xlane.xlu1 %548 }
 0x3b8   : > { %838 = vrcp.f32 %v549_v45 }
 0x3b9   : > { %v610_v46 = vpack.c.bf16 %v609_v44, %v609_v44 }
 0x3bd   : > { %777 = vmatmul.msk.bf16.vlgmr.msra.gmra.mxu2 %vm402_vm5, %v610_v46 }
 0x3be   : > { %v839_v47 = vpop.eup %838 }
 0x3bf   : > { %v551_v48 = vmul.f32 %v839_v47, %v831_v26 }
 0x3c1   : > { %v552_v49 = vpack.c.bf16 %v551_v48, %v551_v48 }
 0x3c3   : > { %775 = vmatmul.msk.bf16.vlgmr.msrb.gmra.mxu1 %vm402_vm5, %v552_v49 }
 0x420   : > { %v454_v50 = vpop.f32.mrf.mxu2 }
 0x428   : > { %v456_v51 = vpop.f32.mrf.mxu2 }
 0x430   : > { %v512_v52 = vpop.f32.mrf.mxu2 }
 0x431   : > { %633 = vrot.lane.b32.xlu1 %v512_v52, %s860_s15 }
 0x438   : > { %v514_v53 = vpop.f32.mrf.mxu2 }
 0x440   : > { %v570_v54 = vpop.f32.mrf.mxu1  ;;  %v628_v55 = vpop.f32.mrf.mxu2 }
 0x441   : > { %641 = vrot.lane.b32.xlu0 %v628_v55, %s861_s16  ;;  %637 = vrot.lane.b32.xlu2 %v570_v54, %s862_s17 }
 0x448   : > { %v572_v56 = vpop.f32.mrf.mxu1  ;;  %v630_v57 = vpop.f32.mrf.mxu2 }
 0x49b   : > { %v638_v62 = vpop.permute.xlu2 %637 }
 0x4a3   : > { %v634_v60 = vpop.permute.xlu1 %633 }
 0x4a4   : > { %v644_v61 = vsel %vm402_vm5, %v454_v50, %v634_v60 }
 0x4a5   : > { %v646_v1 = vsel %vm645_vm7, %v644_v61, %v638_v62 }
 0x4b3   : > { %v642_v63 = vpop.permute.xlu0 %641 }
 0x4b4   : > { %v648_v2 = vsel %vm647_vm8, %v646_v1, %v642_v63 }
 0x4b5   : > { %v649_v3 = vpack.c.bf16 %v648_v2, %v648_v2 }
 0x4b7   : > { %786 = vmatmul.msk.bf16.vlgmr.msra.gmra.mxu0 %vm322_vm0, %v649_v3 }
 0x534   : > { %v682_v5 = vpop.f32.mrf.mxu0 }
 0x535   : > { %v683_v6 = vadd.f32 %v819_v4, %v682_v5 }
 0x537   : > { %v686_v7 = vadd.f32 %v683_v6, %v922_v0 }
 0x539   : > { %687 = vst.msk [vmem:[%s317_s26] sm:$0xff] %vm322_vm0, %v686_v7 }
 0x53c   : > { %v684_v8 = vpop.f32.mrf.mxu0 }
 0x53d PF: > { %s18_s27 = sadd.s32 1, %s846_s27  }
 0x53e   : > { %p15_p4 = scmp.ge.s32.totalorder %s18_s27, 4  }
 0x540   :  { %17 = sbr.rel (!%p15_p4) target bundleno = 1 (0x1), region = 85 }

// kernel: _lambda_.15
= control target key start
LH: loop header
LB: loop body
LE: loop exit
PB: predicated region body
PF: predicated region fallthrough
CT: control target
= control target key end

     0   :  { %s1007_s13 = smov 0   ;;  %s1114_s0 = inlined_call_operand.vmem [shape: f32[2,8,32], index: 0, kind: input, shape index: {}]   ;;  %s1115_s1 = inlined_call_operand.vmem [shape: f32[2,16,32], index: 1, kind: input, shape index: {}]   ;;  %s1116_s2 = inlined_call_operand.vmem [shape: f32[1,32], index: 2, kind: input, shape index: {}]   ;;  %s1117_s3 = inlined_call_operand.vmem [shape: f32[1,32], index: 3, kind: input, shape index: {}]   ;;  %s1118_s4 = inlined_call_operand.vmem [shape: bf16[32,32], index: 4, kind: input, shape index: {}]   ;;  %s1119_s5 = inlined_call_operand.vmem [shape: f32[1,32], index: 5, kind: input, shape index: {}]   ;;  %s1120_s6 = inlined_call_operand.vmem [shape: bf16[32,64], index: 6, kind: input, shape index: {}]   ;;  %s1121_s7 = inlined_call_operand.vmem [shape: f32[1,64], index: 7, kind: input, shape index: {}]   ;;  %s1122_s8 = inlined_call_operand.vmem [shape: bf16[32,32], index: 8, kind: input, shape index: {}]   ;;  %s1123_s9 = inlined_call_operand.vmem [shape: f32[1,32], index: 9, kind: input, shape index: {}]   ;;  %s1124_s10 = inlined_call_operand.vmem [shape: f32[2,8,32], index: 10, kind: output, shape index: {}]  }
   0x1 LB: > { %s836_s14 = sadd.s32 4294967295, %s939_s13   ;;  %p840_p0 = scmp.ge.s32.totalorder %s939_s13, 1  ;;  %s939_s13 = sphi %s1007_s13, %s20_s13  }
   0x2   : > { %p321_p1 = scmp.lt.s32.totalorder %s939_s13, 3 }
   0x4   : > { %p322_p2 = pnand %p840_p0, %p321_p1 }
   0x5   : > { %p362_p3 = scmp.lt.s32.totalorder (!%p322_p2), %s836_s14, 1  ;;  %s942_s16 = smov (!%p322_p2), 96  }
   0x6   : > { %325 = sbr.rel (%p322_p2) target bundleno = 1617 (0x651), region = 60  ;;  %s943_s17 = smov (!%p322_p2), 120  }
   0x7   : > { %s945_s25 = smov (!%p322_p2), 112   ;;  %s946_s26 = smov (!%p322_p2), 88  }
   0x8   : > { %s947_s27 = smov (!%p322_p2), 80   ;;  %s948_s28 = smov (!%p322_p2), 72  }
   0x9   : > { %s949_s29 = smov (!%p322_p2), 8   ;;  %s950_s30 = smov (!%p322_p2), 16  }
   0xa   : > { %s951_s11 = smov (!%p322_p2), 24  }
   0xb   : > { %s1126_s14 = smov (!%p362_p3, %s836_s14), 1  ;;  %vm381_vm0 = vcmask 261120   ;;  %v941_v2 = vmov 32.0   ;;  %v886_v3 = vld [vmem:[%s1120_s6 + $0x8] sm:$0xff]  ;;  %v885_v4 = vld [vmem:[%s1120_s6] sm:$0xff]  ;;  %vm496_vm2 = vcmask 64512  }
   0xc   : > { %s841_s15 = sshll.u32 %s1126_s14, 3  ;;  %s882_s19 = sshll.u32 %s1126_s14, 4  ;;  %913 = vrcp.f32 %v941_v2  ;;  %486 = vmatpush.bf16.msra.mxu1 %v886_v3  ;;  %v884_v19 = vld [vmem:[%s1118_s4 + $0x8] sm:$0xff]  ;;  %v883_v20 = vld [vmem:[%s1118_s4] sm:$0xff]  ;;  %vm517_vm6 = vcmask 130048   ;;  %vm730_vm7 = vcmask 195584  }
   0xd   : > { %s365_s18 = scalar_lea.vmem %s1114_s0, %s841_s15  ;;  %s370_s22 = scalar_lea.vmem %s1115_s1, %s882_s19  ;;  %449 = vmatpush.bf16.msra.mxu0 %v884_v19  ;;  %v910_v24 = vld [vmem:[%s1121_s7] ss:$0 sm:$0xff] }
   0xe   : > { %v1023_v0 = vld [vmem:[%s365_s18] sm:$0xff]  ;;  %v378_v6 = vld [vmem:[%s370_s22 + $0x8] sm:$0xff]  ;;  %s374_s23 = scalar_lea.vmem %s1124_s10, %s841_s15 }
   0xf   : > { %v382_v1 = vsel %vm381_vm0, %v1023_v0, 0.0  ;;  %v377_v5 = vld [vmem:[%s370_s22] sm:$0xff]  ;;  %s944_s22 = smov 104  }
  0x10   : > { %383 = vadd.xlane.f32.xlu0 %v382_v1  ;;  %v456_v8 = vpack.c.bf16 %v378_v6, %v377_v5  ;;  %487 = vmatpush.bf16.msra.mxu1 %v885_v4  ;;  %v908_v37 = vld [vmem:[%s1116_s2] ss:$0 sm:$0xff] }
  0x11   : > { %450 = vmatpush.bf16.msra.mxu0 %v883_v20  ;;  %v909_v40 = vld [vmem:[%s1117_s3] ss:$0 sm:$0xff] }
  0x12   : > { %v914_v7 = vpop.eup %913  ;;  %v911_v47 = vld [vmem:[%s1119_s5] ss:$0 sm:$0xff] }
  0x13   : > { %v386_v9 = vmul.f32 32.0, %v914_v7  ;;  %862 = vmatmul.msk.bf16.vlgmr.msra.gmra.mxu1 %vm381_vm0, %v456_v8  ;;  %vm390_vm1 = vweird.f32 %v914_v7 }
  0x15   : > { %v387_v10 = vsub.f32 1.0, %v386_v9 }
  0x17   : > { %v388_v11 = vmul.f32 %v914_v7, %v387_v10 }
  0x19   : > { %v389_v12 = vadd.f32 %v914_v7, %v388_v11 }
  0x1b   : > { %v391_v13 = vsel %vm390_vm1, %v914_v7, %v389_v12 }
  0x83   : > { %v384_v14 = vpop.xlane.xlu0 %383 }
  0x84   : > { %v392_v15 = vmul.f32 %v391_v13, %v384_v14 }
  0x86   : > { %v393_v16 = vsub.f32 %v1023_v0, %v392_v15 }
  0x88   : > { %v394_v17 = vmul.f32 %v393_v16, %v393_v16 }
  0x8a   : > { %v395_v18 = vsel %vm381_vm0, %v394_v17, 0.0 }
  0x8b   : > { %396 = vadd.xlane.f32.xlu0 %v395_v18 }
  0x90   : > { %v489_v21 = vpop.f32.mrf.mxu1 }
  0x91   : > { %v490_v26 = vadd.f32 %v910_v24, %v489_v21 }
  0x98   : > { %v491_v27 = vpop.f32.mrf.mxu1 }
  0x99   : > { %v492_v28 = vadd.f32 %v910_v24, %v491_v27 }
  0x9b   : > { %v1049_v29 = vpack.c.bf16 %v492_v28, %v490_v26 }
  0x9d   : > { %531 = vrot.lane.b32.xlu2 %v1049_v29, %s942_s16  ;;  %v501_v32 = vsel %vm496_vm2, %v1049_v29, 0 }
  0x9e   : > { %510 = vmatpush.bf16.xpose.msra.mxu2 %v501_v32 }
  0xa5   : > { %553 = vrot.lane.b32.xlu2 %v1049_v29, %s943_s17 }
  0xad   : > { %663 = vrot.lane.b32.xlu2 %v1049_v29, %s944_s22 }
  0xf7   : > { %v532_v44 = vpop.permute.xlu2 %531 }
  0xf8   : > { %544 = vmatpush.bf16.msra.mxu3 %v532_v44 }
  0xfe   : > { %v397_v22 = vpop.xlane.xlu0 %396 }
  0xff   : > { %v398_v23 = vmul.f32 %v397_v22, %v391_v13  ;;  %v554_v45 = vpop.permute.xlu2 %553 }
 0x100   : > { %v559_v46 = vsel %vm496_vm2, %v554_v45, 0 }
 0x101   : > { %v399_v25 = vadd.f32 1e-05, %v398_v23  ;;  %568 = vmatpush.bf16.xpose.msrb.mxu3 %v559_v46 }
 0x103   : > { %915 = vrsqrt.f32 %v399_v25  ;;  %vm406_vm4 = vweird.f32 %v399_v25 }
 0x107   : > { %v664_v1 = vpop.permute.xlu2 %663 }
 0x108   : > { %v669_v3 = vsel %vm496_vm2, %v664_v1, 0 }
 0x109   : > { %v916_v30 = vpop.eup %915 }
 0x10a   : > { %v401_v31 = vmul.f32 %v916_v30, %v399_v25  ;;  %vm407_vm3 = vweird.f32 %v916_v30 }
 0x10b   : > { %vm408_vm5 = vmor %vm406_vm4, %vm407_vm3 }
 0x10c   : > { %v402_v33 = vmul.f32 %v916_v30, %v401_v31 }
 0x10e   : > { %v403_v34 = vmul.f32 0.5, %v402_v33 }
 0x110   : > { %v404_v35 = vsub.f32 1.5, %v403_v34 }
 0x112   : > { %v405_v36 = vmul.f32 %v916_v30, %v404_v35 }
 0x114   : > { %v409_v38 = vsel %vm408_vm5, %v916_v30, %v405_v36 }
 0x115   : > { %v410_v39 = vmul.f32 %v409_v38, %v393_v16 }
 0x117   : > { %v414_v41 = vmul.f32 %v908_v37, %v410_v39 }
 0x119   : > { %v418_v42 = vadd.f32 %v909_v40, %v414_v41 }
 0x11b   : > { %v419_v43 = vpack.c.bf16 %v418_v42, %v418_v42 }
 0x11d   : > { %853 = vmatmul.msk.bf16.vlgmr.msra.gmra.mxu0 %vm381_vm0, %v419_v43 }
 0x19a   : > { %v452_v48 = vpop.f32.mrf.mxu0 }
 0x19b   : > { %v453_v49 = vadd.f32 %v911_v47, %v452_v48 }
 0x19d   : > { %v494_v50 = vpack.c.bf16 %v453_v49, %v453_v49 }
 0x19f   : > { %606 = vrot.lane.b32.xlu2 %v494_v50, %s945_s25  ;;  %551 = vrot.lane.b32.xlu0 %v494_v50, %s943_s17 }
 0x1a0   : > { %863 = vmatmul.msk.bf16.vlgmr.msra.gmra.mxu2 %vm496_vm2, %v494_v50 }
 0x1a2   : > { %v454_v51 = vpop.f32.mrf.mxu0 }
 0x1a7   : > { %661 = vrot.lane.b32.xlu2 %v494_v50, %s944_s22 }
 0x1f9   : > { %v607_v7 = vpop.permute.xlu2 %606 }
 0x201   : > { %v662_v8 = vpop.permute.xlu2 %661 }
 0x211   : > { %v552_v6 = vpop.permute.xlu0 %551 }
 0x223   : > { %v512_v52 = vpop.f32.mrf.mxu2 }
 0x224   : > { %v516_v53 = vmul.f32 0.35355338, %v512_v52 }
 0x226   : > { %v518_v54 = vsel %vm517_vm6, %v516_v53, -inf }
 0x227   : > { %519 = vmax.xlane.f32.xlu1 %v518_v54 }
 0x22b   : > { %v514_v55 = vpop.f32.mrf.mxu2 }
 0x29a   : > { %v520_v56 = vpop.xlane.xlu1 %519 }
 0x29b   : > { %v521_v57 = vsub.f32 %v516_v53, %v520_v56 }
 0x29d   : > { %v522_v58 = vmul.f32 1.442695, %v521_v57 }
 0x29f   : > { %917 = vpow2.f32 %v522_v58 }
 0x2a5   : > { %v918_v59 = vpop.eup %917 }
 0x2a6   : > { %v524_v60 = vsel %vm517_vm6, %v918_v59, 0.0 }
 0x2a7   : > { %525 = vadd.xlane.f32.xlu1 %v524_v60  ;;  %v887_v60 = vld [vmem:[%s1122_s8] sm:$0xff] }
 0x2c0   : > { %608 = vrot.lane.b32.xlu1 %v1049_v29, %s945_s25 }
 0x31a   : > { %v526_v61 = vpop.xlane.xlu1 %525 }
 0x31b   : > { %919 = vrcp.f32 %v526_v61 }
 0x321   : > { %v920_v62 = vpop.eup %919 }
 0x322   : > { %v528_v63 = vmul.f32 %v920_v62, %v918_v59  ;;  %v888_v59 = vld [vmem:[%s1122_s8 + $0x8] sm:$0xff] }
 0x324   : > { %v529_v2 = vpack.c.bf16 %v528_v63, %v528_v63 }
 0x326   : > { %864 = vmatmul.msk.bf16.vlgmr.msra.gmra.mxu3 %vm517_vm6, %v529_v2 }
 0x327   : > { %678 = vmatpush.bf16.xpose.msra.mxu3 %v669_v3 }
 0x332   : > { %v609_v4 = vpop.permute.xlu1 %608 }
 0x333   : > { %v614_v5 = vsel %vm496_vm2, %v609_v4, 0 }
 0x334   : > { %623 = vmatpush.bf16.xpose.msrb.mxu1 %v614_v5  ;;  %v912_v5 = vld [vmem:[%s1123_s9] ss:$0 sm:$0xff] }
 0x336   : > { %865 = vmatmul.msk.bf16.vlgmr.msrb.gmra.mxu3 %vm496_vm2, %v552_v6 }
 0x33b   : > { %867 = vmatmul.msk.bf16.vlgmr.msrb.gmra.mxu1 %vm496_vm2, %v607_v7 }
 0x33c   : > { %762 = vmatpush.bf16.msra.mxu1 %v888_v59 }
 0x340   : > { %763 = vmatpush.bf16.msra.mxu1 %v887_v60 }
 0x346   : > { %869 = vmatmul.msk.bf16.vlgmr.msra.gmra.mxu3 %vm496_vm2, %v662_v8 }
 0x3a9   : > { %v1077_v9 = vpop.f32.mrf.mxu3 }
 0x3b1   : > { %v548_v10 = vpop.f32.mrf.mxu3 }
 0x3b8   : > { %v625_v11 = vpop.f32.mrf.mxu1 }
 0x3b9   : > { %v629_v12 = vmul.f32 0.35355338, %v625_v11  ;;  %v570_v13 = vpop.f32.mrf.mxu3 }
 0x3ba   : > { %v574_v14 = vmul.f32 0.35355338, %v570_v13 }
 0x3bb   : > { %v630_v15 = vsel %vm517_vm6, %v629_v12, -inf }
 0x3bc   : > { %631 = vmax.xlane.f32.xlu2 %v630_v15  ;;  %v575_v16 = vsel %vm517_vm6, %v574_v14, -inf }
 0x3bd   : > { %576 = vmax.xlane.f32.xlu0 %v575_v16 }
 0x3c0   : > { %v627_v17 = vpop.f32.mrf.mxu1 }
 0x3c1   : > { %v572_v18 = vpop.f32.mrf.mxu3 }
 0x3c9   : > { %v680_v19 = vpop.f32.mrf.mxu3 }
 0x3ca   : > { %v684_v20 = vmul.f32 0.35355338, %v680_v19 }
 0x3cc   : > { %v685_v21 = vsel %vm517_vm6, %v684_v20, -inf }
 0x3cd   : > { %686 = vmax.xlane.f32.xlu1 %v685_v21 }
 0x3d1   : > { %v682_v22 = vpop.f32.mrf.mxu3 }
 0x3d4   : > { %587 = vrot.lane.b32.xlu2 %v1049_v29, %s946_s26 }
 0x42f   : > { %v632_v23 = vpop.xlane.xlu2 %631 }
 0x430   : > { %v633_v24 = vsub.f32 %v629_v12, %v632_v23  ;;  %v577_v25 = vpop.xlane.xlu0 %576 }
 0x431   : > { %v578_v26 = vsub.f32 %v574_v14, %v577_v25 }
 0x432   : > { %v634_v27 = vmul.f32 1.442695, %v633_v24 }
 0x433   : > { %v579_v28 = vmul.f32 1.442695, %v578_v26 }
 0x434   : > { %921 = vpow2.f32 %v634_v27 }
 0x435   : > { %923 = vpow2.f32 %v579_v28 }
 0x437   : > { %v588_v30 = vpop.permute.xlu2 %587 }
 0x438   : > { %600 = vmatpush.bf16.msrb.mxu0 %v588_v30 }
 0x43a   : > { %v922_v31 = vpop.eup %921 }
 0x43b   : > { %v924_v32 = vpop.eup %923  ;;  %v636_v33 = vsel %vm517_vm6, %v922_v31, 0.0 }
 0x43c   : > { %637 = vadd.xlane.f32.xlu1 %v636_v33  ;;  %v581_v34 = vsel %vm517_vm6, %v924_v32, 0.0 }
 0x43d   : > { %582 = vadd.xlane.f32.xlu0 %v581_v34 }
 0x440   : > { %v687_v35 = vpop.xlane.xlu1 %686 }
 0x441   : > { %v688_v36 = vsub.f32 %v684_v20, %v687_v35 }
 0x443   : > { %v689_v37 = vmul.f32 1.442695, %v688_v36 }
 0x445   : > { %925 = vpow2.f32 %v689_v37 }
 0x44b   : > { %v926_v38 = vpop.eup %925 }
 0x44c   : > { %v691_v39 = vsel %vm517_vm6, %v926_v38, 0.0 }
 0x44d   : > { %692 = vadd.xlane.f32.xlu0 %v691_v39 }
 0x455   : > { %642 = vrot.lane.b32.xlu1 %v1049_v29, %s947_s27 }
 0x461   : > { %697 = vrot.lane.b32.xlu0 %v1049_v29, %s948_s28 }
 0x4af   : > { %v638_v43 = vpop.xlane.xlu1 %637 }
 0x4b0   : > { %v583_v40 = vpop.xlane.xlu0 %582 }
 0x4b1   : > { %927 = vrcp.f32 %v583_v40 }
 0x4b2   : > { %929 = vrcp.f32 %v638_v43 }
 0x4b7   : > { %v928_v41 = vpop.eup %927 }
 0x4b8   : > { %v585_v42 = vmul.f32 %v928_v41, %v924_v32  ;;  %v930_v45 = vpop.eup %929 }
 0x4b9   : > { %v640_v46 = vmul.f32 %v930_v45, %v922_v31 }
 0x4ba   : > { %v586_v44 = vpack.c.bf16 %v585_v42, %v585_v42 }
 0x4bb   : > { %v641_v49 = vpack.c.bf16 %v640_v46, %v640_v46 }
 0x4bc   : > { %866 = vmatmul.msk.bf16.vlgmr.msrb.gmra.mxu0 %vm517_vm6, %v586_v44 }
 0x4c0   : > { %v693_v47 = vpop.xlane.xlu0 %692 }
 0x4c1   : > { %931 = vrcp.f32 %v693_v47 }
 0x4c7   : > { %v643_v48 = vpop.permute.xlu1 %642  ;;  %v932_v50 = vpop.eup %931 }
 0x4c8   : > { %655 = vmatpush.bf16.msrb.mxu2 %v643_v48  ;;  %v695_v29 = vmul.f32 %v932_v50, %v926_v38 }
 0x4ca   : > { %v696_v52 = vpack.c.bf16 %v695_v29, %v695_v29 }
 0x4cb   : > { %868 = vmatmul.msk.bf16.vlgmr.msrb.gmra.mxu2 %vm517_vm6, %v641_v49 }
 0x4d3   : > { %v698_v51 = vpop.permute.xlu0 %697 }
 0x4d4   : > { %710 = vmatpush.bf16.msra.mxu0 %v698_v51 }
 0x4d7   : > { %870 = vmatmul.msk.bf16.vlgmr.msra.gmra.mxu0 %vm517_vm6, %v696_v52 }
 0x539   : > { %v602_v53 = vpop.f32.mrf.mxu0 }
 0x53a   : > { %717 = vrot.lane.b32.xlu2 %v602_v53, %s949_s29 }
 0x541   : > { %v604_v54 = vpop.f32.mrf.mxu0 }
 0x54e   : > { %v657_v55 = vpop.f32.mrf.mxu2 }
 0x54f   : > { %721 = vrot.lane.b32.xlu2 %v657_v55, %s950_s30 }
 0x554   : > { %v712_v56 = vpop.f32.mrf.mxu0 }
 0x555   : > { %725 = vrot.lane.b32.xlu0 %v712_v56, %s951_s11 }
 0x556   : > { %v659_v57 = vpop.f32.mrf.mxu2 }
 0x55c   : > { %v714_v58 = vpop.f32.mrf.mxu0 }
 0x594   : > { %v718_v61 = vpop.permute.xlu2 %717 }
 0x595   : > { %v728_v63 = vsel %vm496_vm2, %v1077_v9, %v718_v61 }
 0x5a9   : > { %v722_v62 = vpop.permute.xlu2 %721 }
 0x5aa   : > { %v729_v1 = vsel %vm517_vm6, %v728_v63, %v722_v62 }
 0x5c7   : > { %v726_v2 = vpop.permute.xlu0 %725 }
 0x5c8   : > { %v731_v3 = vsel %vm730_vm7, %v729_v1, %v726_v2 }
 0x5c9   : > { %v732_v4 = vpack.c.bf16 %v731_v3, %v731_v3 }
 0x5cb   : > { %879 = vmatmul.msk.bf16.vlgmr.msra.gmra.mxu1 %vm381_vm0, %v732_v4 }
 0x648   : > { %v765_v6 = vpop.f32.mrf.mxu1 }
 0x649   : > { %v766_v7 = vadd.f32 %v912_v5, %v765_v6 }
 0x64b   : > { %v769_v8 = vadd.f32 %v766_v7, %v1023_v0 }
 0x64d   : > { %770 = vst.msk [vmem:[%s374_s23] sm:$0xff] %vm381_vm0, %v769_v8 }
 0x650   : > { %v767_v9 = vpop.f32.mrf.mxu1 }
 0x651 PF: > { %s20_s13 = sadd.s32 1, %s939_s13  }
 0x652   : > { %p17_p4 = scmp.ge.s32.totalorder %s20_s13, 4  }
 0x654   :  { %19 = sbr.rel (!%p17_p4) target bundleno = 1 (0x1), region = 93 }

// kernel: _lambda_.27
= control target key start
LH: loop header
LB: loop body
LE: loop exit
PB: predicated region body
PF: predicated region fallthrough
CT: control target
= control target key end

     0   :  { %vm25_vm0 = vcmask 261120   ;;  %v200_v4 = vmov 32.0   ;;  %s263_s0 = inlined_call_operand.vmem [shape: f32[16,32], index: 0, kind: input, shape index: {}]   ;;  %s264_s1 = inlined_call_operand.vmem [shape: f32[1,32], index: 1, kind: input, shape index: {}]   ;;  %s265_s2 = inlined_call_operand.vmem [shape: f32[1,32], index: 2, kind: input, shape index: {}]   ;;  %s266_s4 = inlined_call_operand.vmem [shape: f32[1,128], index: 4, kind: input, shape index: {}]   ;;  %s267_s3 = inlined_call_operand.vmem [shape: bf16[32,128], index: 3, kind: input, shape index: {}]   ;;  %s268_s5 = inlined_call_operand.vmem [shape: f32[16,128], index: 5, kind: output, shape index: {}]  }
   0x1   :  { %v21_v0 = vld [vmem:[%s263_s0] sm:$0xff]  ;;  %v22_v2 = vld [vmem:[%s263_s0 + $0x8] sm:$0xff]  ;;  %186 = vrcp.f32 %v200_v4 }
   0x2   :  { %v26_v1 = vsel %vm25_vm0, %v21_v0, 0.0  ;;  %v29_v3 = vsel %vm25_vm0, %v22_v2, 0.0  ;;  %v181_v21 = vld [vmem:[%s267_s3 + $0x8] sm:$0xff]  ;;  %v180_v23 = vld [vmem:[%s267_s3] sm:$0xff] }
   0x3   :  { %27 = vadd.xlane.f32.xlu0 %v26_v1  ;;  %117 = vmatpush.bf16.msra.mxu0 %v181_v21  ;;  %v183_v42 = vld [vmem:[%s264_s1] ss:$0 sm:$0xff] }
   0x4   :  { %v184_v47 = vld [vmem:[%s265_s2] ss:$0 sm:$0xff] }
   0x5   :  { %v185_v52 = vld [vmem:[%s266_s4] ss:$0 sm:$0xff] }
   0x7   :  { %v187_v5 = vpop.eup %186  ;;  %118 = vmatpush.bf16.msra.mxu0 %v180_v23 }
   0x8   :  { %v33_v6 = vmul.f32 32.0, %v187_v5  ;;  %vm37_vm1 = vweird.f32 %v187_v5 }
   0xa   :  { %v34_v7 = vsub.f32 1.0, %v33_v6 }
   0xb   :  { %30 = vadd.xlane.f32.xlu0 %v29_v3 }
   0xc   :  { %v35_v8 = vmul.f32 %v187_v5, %v34_v7 }
   0xe   :  { %v36_v9 = vadd.f32 %v187_v5, %v35_v8 }
  0x10   :  { %v38_v10 = vsel %vm37_vm1, %v187_v5, %v36_v9 }
  0x76   :  { %v28_v11 = vpop.xlane.xlu0 %27 }
  0x77   :  { %v39_v12 = vmul.f32 %v38_v10, %v28_v11 }
  0x79   :  { %v41_v13 = vsub.f32 %v21_v0, %v39_v12 }
  0x7b   :  { %v43_v14 = vmul.f32 %v41_v13, %v41_v13 }
  0x7d   :  { %v45_v15 = vsel %vm25_vm0, %v43_v14, 0.0 }
  0x7e   :  { %46 = vadd.xlane.f32.xlu1 %v45_v15  ;;  %v31_v16 = vpop.xlane.xlu0 %30 }
  0x7f   :  { %v40_v17 = vmul.f32 %v38_v10, %v31_v16 }
  0x81   :  { %v42_v18 = vsub.f32 %v22_v2, %v40_v17 }
  0x83   :  { %v44_v19 = vmul.f32 %v42_v18, %v42_v18 }
  0x85   :  { %v48_v20 = vsel %vm25_vm0, %v44_v19, 0.0 }
  0x86   :  { %49 = vadd.xlane.f32.xlu1 %v48_v20 }
  0xf1   :  { %v47_v22 = vpop.xlane.xlu1 %46 }
  0xf2   :  { %v51_v24 = vmul.f32 %v47_v22, %v38_v10 }
  0xf4   :  { %v53_v25 = vadd.f32 1e-05, %v51_v24 }
  0xf6   :  { %188 = vrsqrt.f32 %v53_v25  ;;  %vm61_vm3 = vweird.f32 %v53_v25 }
  0xf9   :  { %v50_v26 = vpop.xlane.xlu1 %49 }
  0xfa   :  { %v52_v27 = vmul.f32 %v50_v26, %v38_v10 }
  0xfc   :  { %v189_v28 = vpop.eup %188  ;;  %v54_v29 = vadd.f32 1e-05, %v52_v27 }
  0xfd   :  { %v56_v30 = vmul.f32 %v189_v28, %v53_v25  ;;  %vm62_vm2 = vweird.f32 %v189_v28 }
  0xfe   :  { %190 = vrsqrt.f32 %v54_v29  ;;  %vm63_vm4 = vmor %vm61_vm3, %vm62_vm2  ;;  %vm71_vm6 = vweird.f32 %v54_v29 }
  0xff   :  { %v57_v31 = vmul.f32 %v189_v28, %v56_v30 }
 0x101   :  { %v58_v32 = vmul.f32 0.5, %v57_v31 }
 0x103   :  { %v59_v33 = vsub.f32 1.5, %v58_v32 }
 0x104   :  { %v191_v34 = vpop.eup %190 }
 0x105   :  { %v60_v35 = vmul.f32 %v189_v28, %v59_v33  ;;  %v66_v36 = vmul.f32 %v191_v34, %v54_v29  ;;  %vm72_vm5 = vweird.f32 %v191_v34 }
 0x106   :  { %vm73_vm7 = vmor %vm71_vm6, %vm72_vm5 }
 0x107   :  { %v67_v37 = vmul.f32 %v191_v34, %v66_v36  ;;  %v64_v38 = vsel %vm63_vm4, %v189_v28, %v60_v35 }
 0x108   :  { %v75_v41 = vmul.f32 %v64_v38, %v41_v13 }
 0x109   :  { %v68_v39 = vmul.f32 0.5, %v67_v37 }
 0x10a   :  { %v80_v46 = vmul.f32 %v183_v42, %v75_v41 }
 0x10b   :  { %v69_v40 = vsub.f32 1.5, %v68_v39 }
 0x10c   :  { %v85_v49 = vadd.f32 %v184_v47, %v80_v46 }
 0x10d   :  { %v70_v43 = vmul.f32 %v191_v34, %v69_v40 }
 0x10f   :  { %v74_v44 = vsel %vm73_vm7, %v191_v34, %v70_v43 }
 0x110   :  { %v76_v45 = vmul.f32 %v74_v44, %v42_v18 }
 0x112   :  { %v81_v48 = vmul.f32 %v183_v42, %v76_v45 }
 0x114   :  { %v86_v50 = vadd.f32 %v184_v47, %v81_v48 }
 0x116   :  { %v87_v51 = vpack.c.bf16 %v86_v50, %v85_v49 }
 0x118   :  { %177 = vmatmul.msk.bf16.vlgmr.msra.gmra.mxu0 %vm25_vm0, %v87_v51 }
 0x195   :  { %v120_v53 = vpop.f32.mrf.mxu0 }
 0x196   :  { %v121_v54 = vadd.f32 %v185_v52, %v120_v53 }
 0x198   :  { %v178_v55 = vmul.f32 -1.442695, %v121_v54 }
 0x19a   :  { %192 = vpow2.f32 %v178_v55 }
 0x19d   :  { %v122_v56 = vpop.f32.mrf.mxu0 }
 0x19e   :  { %v123_v57 = vadd.f32 %v185_v52, %v122_v56 }
 0x1a0   :  { %v193_v58 = vpop.eup %192  ;;  %v179_v59 = vmul.f32 -1.442695, %v123_v57 }
 0x1a1   :  { %v131_v60 = vadd.f32 1.0, %v193_v58 }
 0x1a2   :  { %194 = vpow2.f32 %v179_v59 }
 0x1a3   :  { %196 = vrcp.f32 %v131_v60  ;;  %v144_v2 = vand.u32 2147483648, %v131_v60  ;;  %v142_v4 = vand.u32 2147483647, %v131_v60  ;;  %vm138_vm9 = vweird.f32 %v131_v60 }
 0x1a5   :  { %v145_v7 = vor.u32 1.1754944e-38, %v144_v2  ;;  %vm143_vm11 = vcmp.eq.f32.partialorder %v142_v4, 8.507059e+37 }
 0x1a8   :  { %v195_v61 = vpop.eup %194 }
 0x1a9   :  { %v197_v62 = vpop.eup %196  ;;  %v132_v63 = vadd.f32 1.0, %v195_v61 }
 0x1aa   :  { %v134_v0 = vmul.f32 %v197_v62, %v131_v60  ;;  %vm139_vm8 = vweird.f32 %v197_v62 }
 0x1ab   :  { %198 = vrcp.f32 %v132_v63  ;;  %vm140_vm10 = vmor %vm138_vm9, %vm139_vm8  ;;  %v159_v12 = vand.u32 2147483648, %v132_v63  ;;  %v157_v14 = vand.u32 2147483647, %v132_v63  ;;  %vm153_vm13 = vweird.f32 %v132_v63 }
 0x1ac   :  { %v135_v1 = vsub.f32 1.0, %v134_v0 }
 0x1ad   :  { %v160_v16 = vor.u32 1.1754944e-38, %v159_v12  ;;  %vm158_vm15 = vcmp.eq.f32.partialorder %v157_v14, 8.507059e+37 }
 0x1ae   :  { %v136_v3 = vmul.f32 %v197_v62, %v135_v1 }
 0x1b0   :  { %v137_v5 = vadd.f32 %v197_v62, %v136_v3 }
 0x1b1   :  { %v199_v6 = vpop.eup %198 }
 0x1b2   :  { %v141_v8 = vsel %vm140_vm10, %v197_v62, %v137_v5  ;;  %v149_v9 = vmul.f32 %v199_v6, %v132_v63  ;;  %vm154_vm12 = vweird.f32 %v199_v6 }
 0x1b3   :  { %v146_v10 = vsel %vm143_vm11, %v145_v7, %v141_v8  ;;  %vm155_vm14 = vmor %vm153_vm13, %vm154_vm12 }
 0x1b4   :  { %163 = vst [vmem:[%s268_s5] sm:$0xff] %v146_v10  ;;  %v150_v11 = vsub.f32 1.0, %v149_v9 }
 0x1b6   :  { %v151_v13 = vmul.f32 %v199_v6, %v150_v11 }
 0x1b8   :  { %v152_v15 = vadd.f32 %v199_v6, %v151_v13 }
 0x1ba   :  { %v156_v17 = vsel %vm155_vm14, %v199_v6, %v152_v15 }
 0x1bb   :  { %v161_v18 = vsel %vm158_vm15, %v160_v16, %v156_v17 }
 0x1bc   :  { %164 = vst [vmem:[%s268_s5 + $0x8] sm:$0xff] %v161_v18 }

// kernel: _lambda_.16
= control target key start
LH: loop header
LB: loop body
LE: loop exit
PB: predicated region body
PF: predicated region fallthrough
CT: control target
= control target key end

     0   :  { %vm31_vm0 = vcmask 261120   ;;  %v239_v4 = vmov 32.0   ;;  %vm170_vm8 = vcmask 523264   ;;  %s339_s0 = inlined_call_operand.vmem [shape: f32[16,32], index: 0, kind: input, shape index: {}]   ;;  %s340_s1 = inlined_call_operand.vmem [shape: f32[1,32], index: 1, kind: input, shape index: {}]   ;;  %s341_s2 = inlined_call_operand.vmem [shape: f32[1,32], index: 2, kind: input, shape index: {}]   ;;  %s342_s4 = inlined_call_operand.vmem [shape: f32[1,64], index: 4, kind: input, shape index: {}]   ;;  %s343_s3 = inlined_call_operand.vmem [shape: bf16[32,64], index: 3, kind: input, shape index: {}]   ;;  %s344_s6 = inlined_call_operand.vmem [shape: f32[1,32], index: 6, kind: input, shape index: {}]   ;;  %s345_s5 = inlined_call_operand.vmem [shape: bf16[64,32], index: 5, kind: input, shape index: {}]   ;;  %s346_s7 = inlined_call_operand.vmem [shape: f32[16,32], index: 7, kind: output, shape index: {}]  }
   0x1   :  { %v283_v0 = vld [vmem:[%s339_s0] sm:$0xff]  ;;  %v290_v2 = vld [vmem:[%s339_s0 + $0x8] sm:$0xff]  ;;  %233 = vrcp.f32 %v239_v4  ;;  %v227_v52 = vld [vmem:[%s345_s5 + $0x18] sm:$0xff] }
   0x2   :  { %v32_v1 = vsel %vm31_vm0, %v283_v0, 0.0  ;;  %v35_v3 = vsel %vm31_vm0, %v290_v2, 0.0  ;;  %v223_v21 = vld [vmem:[%s343_s3 + $0x8] sm:$0xff]  ;;  %v222_v23 = vld [vmem:[%s343_s3] sm:$0xff]  ;;  %178 = vmatpush.bf16.msra.mxu1 %v227_v52  ;;  %v226_v53 = vld [vmem:[%s345_s5 + $0x10] sm:$0xff] }
   0x3   :  { %33 = vadd.xlane.f32.xlu0 %v32_v1  ;;  %123 = vmatpush.bf16.msra.mxu0 %v223_v21  ;;  %v229_v42 = vld [vmem:[%s340_s1] ss:$0 sm:$0xff]  ;;  %v225_v54 = vld [vmem:[%s345_s5 + $0x8] sm:$0xff] }
   0x4   :  { %v230_v47 = vld [vmem:[%s341_s2] ss:$0 sm:$0xff] }
   0x5   :  { %v224_v55 = vld [vmem:[%s345_s5] sm:$0xff] }
   0x6   :  { %179 = vmatpush.bf16.msra.mxu1 %v226_v53  ;;  %v231_v57 = vld [vmem:[%s342_s4] ss:$0 sm:$0xff] }
   0x7   :  { %v234_v5 = vpop.eup %233  ;;  %124 = vmatpush.bf16.msra.mxu0 %v222_v23  ;;  %v232_v1 = vld [vmem:[%s344_s6] ss:$0 sm:$0xff] }
   0x8   :  { %v39_v6 = vmul.f32 32.0, %v234_v5  ;;  %vm43_vm1 = vweird.f32 %v234_v5 }
   0xa   :  { %v40_v7 = vsub.f32 1.0, %v39_v6  ;;  %180 = vmatpush.bf16.msra.mxu1 %v225_v54 }
   0xb   :  { %36 = vadd.xlane.f32.xlu0 %v35_v3 }
   0xc   :  { %v41_v8 = vmul.f32 %v234_v5, %v40_v7 }
   0xe   :  { %v42_v9 = vadd.f32 %v234_v5, %v41_v8  ;;  %181 = vmatpush.bf16.msra.mxu1 %v224_v55 }
  0x10   :  { %v44_v10 = vsel %vm43_vm1, %v234_v5, %v42_v9 }
  0x76   :  { %v34_v11 = vpop.xlane.xlu0 %33 }
  0x77   :  { %v45_v12 = vmul.f32 %v44_v10, %v34_v11 }
  0x79   :  { %v47_v13 = vsub.f32 %v283_v0, %v45_v12 }
  0x7b   :  { %v49_v14 = vmul.f32 %v47_v13, %v47_v13 }
  0x7d   :  { %v51_v15 = vsel %vm31_vm0, %v49_v14, 0.0 }
  0x7e   :  { %52 = vadd.xlane.f32.xlu1 %v51_v15  ;;  %v37_v16 = vpop.xlane.xlu0 %36 }
  0x7f   :  { %v46_v17 = vmul.f32 %v44_v10, %v37_v16 }
  0x81   :  { %v48_v18 = vsub.f32 %v290_v2, %v46_v17 }
  0x83   :  { %v50_v19 = vmul.f32 %v48_v18, %v48_v18 }
  0x85   :  { %v54_v20 = vsel %vm31_vm0, %v50_v19, 0.0 }
  0x86   :  { %55 = vadd.xlane.f32.xlu1 %v54_v20 }
  0xf1   :  { %v53_v22 = vpop.xlane.xlu1 %52 }
  0xf2   :  { %v57_v24 = vmul.f32 %v53_v22, %v44_v10 }
  0xf4   :  { %v59_v25 = vadd.f32 1e-05, %v57_v24 }
  0xf6   :  { %235 = vrsqrt.f32 %v59_v25  ;;  %vm67_vm3 = vweird.f32 %v59_v25 }
  0xf9   :  { %v56_v26 = vpop.xlane.xlu1 %55 }
  0xfa   :  { %v58_v27 = vmul.f32 %v56_v26, %v44_v10 }
  0xfc   :  { %v236_v28 = vpop.eup %235  ;;  %v60_v29 = vadd.f32 1e-05, %v58_v27 }
  0xfd   :  { %v62_v30 = vmul.f32 %v236_v28, %v59_v25  ;;  %vm68_vm2 = vweird.f32 %v236_v28 }
  0xfe   :  { %237 = vrsqrt.f32 %v60_v29  ;;  %vm69_vm4 = vmor %vm67_vm3, %vm68_vm2  ;;  %vm77_vm6 = vweird.f32 %v60_v29 }
  0xff   :  { %v63_v31 = vmul.f32 %v236_v28, %v62_v30 }
 0x101   :  { %v64_v32 = vmul.f32 0.5, %v63_v31 }
 0x103   :  { %v65_v33 = vsub.f32 1.5, %v64_v32 }
 0x104   :  { %v238_v34 = vpop.eup %237 }
 0x105   :  { %v66_v35 = vmul.f32 %v236_v28, %v65_v33  ;;  %v72_v36 = vmul.f32 %v238_v34, %v60_v29  ;;  %vm78_vm5 = vweird.f32 %v238_v34 }
 0x106   :  { %vm79_vm7 = vmor %vm77_vm6, %vm78_vm5 }
 0x107   :  { %v73_v37 = vmul.f32 %v238_v34, %v72_v36  ;;  %v70_v38 = vsel %vm69_vm4, %v236_v28, %v66_v35 }
 0x108   :  { %v81_v41 = vmul.f32 %v70_v38, %v47_v13 }
 0x109   :  { %v74_v39 = vmul.f32 0.5, %v73_v37 }
 0x10a   :  { %v86_v46 = vmul.f32 %v229_v42, %v81_v41 }
 0x10b   :  { %v75_v40 = vsub.f32 1.5, %v74_v39 }
 0x10c   :  { %v91_v49 = vadd.f32 %v230_v47, %v86_v46 }
 0x10d   :  { %v76_v43 = vmul.f32 %v238_v34, %v75_v40 }
 0x10f   :  { %v80_v44 = vsel %vm79_vm7, %v238_v34, %v76_v43 }
 0x110   :  { %v82_v45 = vmul.f32 %v80_v44, %v48_v18 }
 0x112   :  { %v87_v48 = vmul.f32 %v229_v42, %v82_v45 }
 0x114   :  { %v92_v50 = vadd.f32 %v230_v47, %v87_v48 }
 0x116   :  { %v93_v51 = vpack.c.bf16 %v92_v50, %v91_v49 }
 0x118   :  { %204 = vmatmul.msk.bf16.vlgmr.msra.gmra.mxu0 %vm31_vm0, %v93_v51 }
 0x195   :  { %v126_v56 = vpop.f32.mrf.mxu0 }
 0x196   :  { %v127_v58 = vadd.f32 %v231_v57, %v126_v56 }
 0x198   :  { %v131_v61 = vmax.f32 %v127_v58, 0.0 }
 0x19d   :  { %v128_v59 = vpop.f32.mrf.mxu0 }
 0x19e   :  { %v129_v60 = vadd.f32 %v231_v57, %v128_v59 }
 0x1a0   :  { %v132_v62 = vmax.f32 %v129_v60, 0.0 }
 0x1a2   :  { %v133_v63 = vpack.c.bf16 %v132_v62, %v131_v61 }
 0x1a4   :  { %221 = vmatmul.msk.bf16.vlgmr.msra.gmra.mxu1 %vm170_vm8, %v133_v63 }
 0x221   :  { %v183_v3 = vpop.f32.mrf.mxu1 }
 0x222   :  { %v184_v4 = vadd.f32 %v232_v1, %v183_v3 }
 0x224   :  { %v188_v5 = vadd.f32 %v184_v4, %v283_v0 }
 0x226   :  { %190 = vst.msk [vmem:[%s346_s7] sm:$0xff] %vm31_vm0, %v188_v5 }
 0x229   :  { %v185_v6 = vpop.f32.mrf.mxu1 }
 0x22a   :  { %v186_v7 = vadd.f32 %v232_v1, %v185_v6 }
 0x22c   :  { %v189_v8 = vadd.f32 %v186_v7, %v290_v2 }
 0x22e   :  { %191 = vst.msk [vmem:[%s346_s7 + $0x8] sm:$0xff] %vm31_vm0, %v189_v8 }

// kernel: _lambda_.26
= control target key start
LH: loop header
LB: loop body
LE: loop exit
PB: predicated region body
PF: predicated region fallthrough
CT: control target
= control target key end

     0   :  { %vm25_vm0 = vcmask 261120   ;;  %v152_v4 = vmov 32.0   ;;  %s215_s0 = inlined_call_operand.vmem [shape: f32[16,32], index: 0, kind: input, shape index: {}]   ;;  %s216_s1 = inlined_call_operand.vmem [shape: f32[1,32], index: 1, kind: input, shape index: {}]   ;;  %s217_s2 = inlined_call_operand.vmem [shape: f32[1,32], index: 2, kind: input, shape index: {}]   ;;  %s218_s4 = inlined_call_operand.vmem [shape: f32[1,128], index: 4, kind: input, shape index: {}]   ;;  %s219_s3 = inlined_call_operand.vmem [shape: bf16[32,128], index: 3, kind: input, shape index: {}]   ;;  %s220_s5 = inlined_call_operand.vmem [shape: f32[16,128], index: 5, kind: output, shape index: {}]  }
   0x1   :  { %v21_v0 = vld [vmem:[%s215_s0] sm:$0xff]  ;;  %v22_v2 = vld [vmem:[%s215_s0 + $0x8] sm:$0xff]  ;;  %146 = vrcp.f32 %v152_v4 }
   0x2   :  { %v26_v1 = vsel %vm25_vm0, %v21_v0, 0.0  ;;  %v29_v3 = vsel %vm25_vm0, %v22_v2, 0.0  ;;  %v141_v21 = vld [vmem:[%s219_s3 + $0x8] sm:$0xff]  ;;  %v140_v23 = vld [vmem:[%s219_s3] sm:$0xff] }
   0x3   :  { %27 = vadd.xlane.f32.xlu0 %v26_v1  ;;  %117 = vmatpush.bf16.msra.mxu0 %v141_v21  ;;  %v143_v42 = vld [vmem:[%s216_s1] ss:$0 sm:$0xff] }
   0x4   :  { %v144_v47 = vld [vmem:[%s217_s2] ss:$0 sm:$0xff] }
   0x5   :  { %v145_v52 = vld [vmem:[%s218_s4] ss:$0 sm:$0xff] }
   0x7   :  { %v147_v5 = vpop.eup %146  ;;  %118 = vmatpush.bf16.msra.mxu0 %v140_v23 }
   0x8   :  { %v33_v6 = vmul.f32 32.0, %v147_v5  ;;  %vm37_vm1 = vweird.f32 %v147_v5 }
   0xa   :  { %v34_v7 = vsub.f32 1.0, %v33_v6 }
   0xb   :  { %30 = vadd.xlane.f32.xlu0 %v29_v3 }
   0xc   :  { %v35_v8 = vmul.f32 %v147_v5, %v34_v7 }
   0xe   :  { %v36_v9 = vadd.f32 %v147_v5, %v35_v8 }
  0x10   :  { %v38_v10 = vsel %vm37_vm1, %v147_v5, %v36_v9 }
  0x76   :  { %v28_v11 = vpop.xlane.xlu0 %27 }
  0x77   :  { %v39_v12 = vmul.f32 %v38_v10, %v28_v11 }
  0x79   :  { %v41_v13 = vsub.f32 %v21_v0, %v39_v12 }
  0x7b   :  { %v43_v14 = vmul.f32 %v41_v13, %v41_v13 }
  0x7d   :  { %v45_v15 = vsel %vm25_vm0, %v43_v14, 0.0 }
  0x7e   :  { %46 = vadd.xlane.f32.xlu1 %v45_v15  ;;  %v31_v16 = vpop.xlane.xlu0 %30 }
  0x7f   :  { %v40_v17 = vmul.f32 %v38_v10, %v31_v16 }
  0x81   :  { %v42_v18 = vsub.f32 %v22_v2, %v40_v17 }
  0x83   :  { %v44_v19 = vmul.f32 %v42_v18, %v42_v18 }
  0x85   :  { %v48_v20 = vsel %vm25_vm0, %v44_v19, 0.0 }
  0x86   :  { %49 = vadd.xlane.f32.xlu1 %v48_v20 }
  0xf1   :  { %v47_v22 = vpop.xlane.xlu1 %46 }
  0xf2   :  { %v51_v24 = vmul.f32 %v47_v22, %v38_v10 }
  0xf4   :  { %v53_v25 = vadd.f32 1e-05, %v51_v24 }
  0xf6   :  { %148 = vrsqrt.f32 %v53_v25  ;;  %vm61_vm3 = vweird.f32 %v53_v25 }
  0xf9   :  { %v50_v26 = vpop.xlane.xlu1 %49 }
  0xfa   :  { %v52_v27 = vmul.f32 %v50_v26, %v38_v10 }
  0xfc   :  { %v149_v28 = vpop.eup %148  ;;  %v54_v29 = vadd.f32 1e-05, %v52_v27 }
  0xfd   :  { %v56_v30 = vmul.f32 %v149_v28, %v53_v25  ;;  %vm62_vm2 = vweird.f32 %v149_v28 }
  0xfe   :  { %150 = vrsqrt.f32 %v54_v29  ;;  %vm63_vm4 = vmor %vm61_vm3, %vm62_vm2  ;;  %vm71_vm6 = vweird.f32 %v54_v29 }
  0xff   :  { %v57_v31 = vmul.f32 %v149_v28, %v56_v30 }
 0x101   :  { %v58_v32 = vmul.f32 0.5, %v57_v31 }
 0x103   :  { %v59_v33 = vsub.f32 1.5, %v58_v32 }
 0x104   :  { %v151_v34 = vpop.eup %150 }
 0x105   :  { %v60_v35 = vmul.f32 %v149_v28, %v59_v33  ;;  %v66_v36 = vmul.f32 %v151_v34, %v54_v29  ;;  %vm72_vm5 = vweird.f32 %v151_v34 }
 0x106   :  { %vm73_vm7 = vmor %vm71_vm6, %vm72_vm5 }
 0x107   :  { %v67_v37 = vmul.f32 %v151_v34, %v66_v36  ;;  %v64_v38 = vsel %vm63_vm4, %v149_v28, %v60_v35 }
 0x108   :  { %v75_v41 = vmul.f32 %v64_v38, %v41_v13 }
 0x109   :  { %v68_v39 = vmul.f32 0.5, %v67_v37 }
 0x10a   :  { %v80_v46 = vmul.f32 %v143_v42, %v75_v41 }
 0x10b   :  { %v69_v40 = vsub.f32 1.5, %v68_v39 }
 0x10c   :  { %v85_v49 = vadd.f32 %v144_v47, %v80_v46 }
 0x10d   :  { %v70_v43 = vmul.f32 %v151_v34, %v69_v40 }
 0x10f   :  { %v74_v44 = vsel %vm73_vm7, %v151_v34, %v70_v43 }
 0x110   :  { %v76_v45 = vmul.f32 %v74_v44, %v42_v18 }
 0x112   :  { %v81_v48 = vmul.f32 %v143_v42, %v76_v45 }
 0x114   :  { %v86_v50 = vadd.f32 %v144_v47, %v81_v48 }
 0x116   :  { %v87_v51 = vpack.c.bf16 %v86_v50, %v85_v49 }
 0x118   :  { %139 = vmatmul.msk.bf16.vlgmr.msra.gmra.mxu0 %vm25_vm0, %v87_v51 }
 0x195   :  { %v120_v53 = vpop.f32.mrf.mxu0 }
 0x196   :  { %v121_v54 = vadd.f32 %v145_v52, %v120_v53 }
 0x198   :  { %125 = vst [vmem:[%s220_s5] sm:$0xff] %v121_v54 }
 0x19d   :  { %v122_v55 = vpop.f32.mrf.mxu0 }
 0x19e   :  { %v123_v56 = vadd.f32 %v145_v52, %v122_v55 }
 0x1a0   :  { %126 = vst [vmem:[%s220_s5 + $0x8] sm:$0xff] %v123_v56 }

</bundles_post_ra>
